<compile_context>
chip_gen: v7x
topology: tpu7x:2x2x1
jax: 0.10.0
libtpu: 0.0.40
codegen_flags: <defaults>
</compile_context>

<pallas_src>
import jax
import jax.numpy as jnp
from jax.experimental import pallas as pl
from jax.experimental.pallas import tpu as pltpu


_TILE = 256          # 256x256 f32 score tile (~256 KiB live) -- safe on v5e/v6e/v7x
_NEG_LARGE = -1.0e30  # masked score: exp underflows to exactly 0 (matches -1e12 ref)


def _cosent_kernel(p_col_ref, t_col_ref, p_row_ref, t_row_ref,
                   m_out_ref, l_out_ref, m_sc, l_sc):
    # p_col_ref/t_col_ref: (TILE, 1)   -- "i" side
    # p_row_ref/t_row_ref: (1, TILE)   -- "j" side
    # m_out_ref/l_out_ref: (1, 128)    -- per-row-tile partials (lane 0 used)
    # m_sc/l_sc:           (1, 1) VMEM -- running max / running sum for this row
    j = pl.program_id(1)

    @pl.when(j == 0)
    def _init():
        # Start the running max at 0 (the reference point of the prepended-0
        # term); keeps everything finite even if the whole row is masked.
        m_sc[...] = jnp.zeros_like(m_sc)
        l_sc[...] = jnp.zeros_like(l_sc)

    # Broadcast (TILE,1) against (1,TILE) -> (TILE,TILE); no transpose needed.
    p_i = p_col_ref[...] * 20.0
    p_j = p_row_ref[...] * 20.0
    diff = p_i - p_j                                   # 20*(preds[i] - preds[j])
    cond = t_col_ref[...] < t_row_ref[...]             # targs[i] < targs[j]
    scores = jnp.where(cond, diff, _NEG_LARGE)         # masked -> exp() == 0

    # Online logsumexp: rescale running sum, add this tile's exp-sum.
    m_old = m_sc[...]                                  # (1, 1)
    m_new = jnp.maximum(m_old, jnp.max(scores))        # stays >= 0, never -inf
    p_exp = jnp.exp(scores - m_new)                    # (TILE, TILE)
    tile_sum = jnp.sum(jnp.sum(p_exp, axis=-1, keepdims=True))  # lane reduce, then sublane
    l_sc[...] = l_sc[...] * jnp.exp(m_old - m_new) + tile_sum
    m_sc[...] = m_new

    @pl.when(j == pl.num_programs(1) - 1)
    def _finalize():
        m_out_ref[...] = jnp.broadcast_to(m_sc[...], m_out_ref.shape)
        l_out_ref[...] = jnp.broadcast_to(l_sc[...], l_out_ref.shape)


def _cosent_loss_ref(preds, targs):
    """Pure-JAX reference matching the PyTorch semantics exactly."""
    p = preds.astype(jnp.float32) * 20.0
    t = targs.astype(jnp.float32)
    diff = p[:, None] - p[None, :]
    mask = (t[:, None] < t[None, :]).astype(jnp.float32)
    scores = (diff - (1.0 - mask) * 1e12).reshape(-1)
    scores = jnp.concatenate([jnp.zeros((1,), jnp.float32), scores])
    return jax.scipy.special.logsumexp(scores)


def cosent_loss(preds, targs, *, tile=_TILE, use_pallas=None):
    """preds: (N,) cosine similarities; targs: (N,) labels. Returns scalar f32 loss."""
    n = preds.shape[0]
    if use_pallas is None:
        # Tiny problems: fixed pallas_call overhead dominates; fused XLA wins.
        use_pallas = n >= 64
    if not use_pallas:
        return _cosent_loss_ref(preds, targs)

    n_pad = ((n + tile - 1) // tile) * tile
    num_t = n_pad // tile
    pad = n_pad - n

    p = preds.astype(jnp.float32)
    t = targs.astype(jnp.float32)

    # Padded preds are 0 (their scores are masked anyway).  Targets are padded
    # differently for the row/column views so no padded pair ever satisfies
    # t_i < t_j:  column (i) side padded with +LARGE, row (j) side with -LARGE.
    p_pad = jnp.pad(p, (0, pad))
    p_col = p_pad.reshape(n_pad, 1)
    p_row = p_pad.reshape(1, n_pad)
    t_col = jnp.pad(t, (0, pad), constant_values=1e30).reshape(n_pad, 1)
    t_row = jnp.pad(t, (0, pad), constant_values=-1e30).reshape(1, n_pad)

    m_part, l_part = pl.pallas_call(
        _cosent_kernel,
        out_shape=(
            jax.ShapeDtypeStruct((1, num_t * 128), jnp.float32),
            jax.ShapeDtypeStruct((1, num_t * 128), jnp.float32),
        ),
        grid_spec=pltpu.PrefetchScalarGridSpec(
            num_scalar_prefetch=0,
            grid=(num_t, num_t),
            in_specs=[
                pl.BlockSpec((tile, 1), lambda i, j: (i, 0)),   # preds column view
                pl.BlockSpec((tile, 1), lambda i, j: (i, 0)),   # targs column view
                pl.BlockSpec((1, tile), lambda i, j: (0, j)),   # preds row view
                pl.BlockSpec((1, tile), lambda i, j: (0, j)),   # targs row view
            ],
            out_specs=[
                pl.BlockSpec((1, 128), lambda i, j: (0, i)),    # m partial per row-tile
                pl.BlockSpec((1, 128), lambda i, j: (0, i)),    # l partial per row-tile
            ],
            scratch_shapes=[
                pltpu.VMEM((1, 1), jnp.float32),                # running max
                pltpu.VMEM((1, 1), jnp.float32),                # running sum
            ],
        ),
        compiler_params=pltpu.CompilerParams(
            dimension_semantics=("parallel", "arbitrary")),
    )(p_col, t_col, p_row, t_row)

    # Combine the per-row-tile partial logsumexps with the prepended 0 term.
    m_i = m_part.reshape(num_t, 128)[:, 0]     # (num_t,)  all >= 0 and finite
    l_i = l_part.reshape(num_t, 128)[:, 0]     # (num_t,)  may be 0 for masked rows
    total_m = jnp.maximum(jnp.max(m_i), 0.0)
    total_l = jnp.exp(0.0 - total_m) + jnp.sum(l_i * jnp.exp(m_i - total_m))
    return total_m + jnp.log(total_l)


if __name__ == "__main__":
    key = jax.random.PRNGKey(0)
    k1, k2 = jax.random.split(key)

    # Batch of sentence-pair cosine similarities + binary labels.
    N = 300  # non-multiple of the 256 tile -> exercises padding and a 2x2 grid
    preds = jax.random.uniform(k1, (N,), jnp.float32, minval=-1.0, maxval=1.0)
    targs = (jax.random.uniform(k2, (N,)) > 0.5).astype(jnp.int32)

    loss = cosent_loss(preds, targs)                  # Pallas kernel path
    jax.block_until_ready(loss)
    ref = _cosent_loss_ref(preds, targs)
    assert jnp.allclose(loss, ref, atol=1e-3, rtol=1e-4), (loss, ref)

    # Tiny-N case forced through the kernel (single padded tile).
    Ns = 8
    loss_s = cosent_loss(preds[:Ns], targs[:Ns], use_pallas=True)
    jax.block_until_ready(loss_s)
    ref_s = _cosent_loss_ref(preds[:Ns], targs[:Ns])
    assert jnp.allclose(loss_s, ref_s, atol=1e-3, rtol=1e-4), (loss_s, ref_s)

    print("KERNEL_OK")
</pallas_src>

<mosaic_0001>
module attributes {stable_mosaic.version = 11 : i64} {
  func.func @_cosent_kernel(%arg0: i32, %arg1: i32, %arg2: memref<256x1xf32, #tpu.memory_space<vmem>>, %arg3: memref<256x1xf32, #tpu.memory_space<vmem>>, %arg4: memref<1x256xf32, #tpu.memory_space<vmem>>, %arg5: memref<1x256xf32, #tpu.memory_space<vmem>>, %arg6: memref<1x128xf32, #tpu.memory_space<vmem>>, %arg7: memref<1x128xf32, #tpu.memory_space<vmem>>, %arg8: memref<1x1xf32, #tpu.memory_space<vmem>>, %arg9: memref<1x1xf32, #tpu.memory_space<vmem>>) attributes {dimension_semantics = [#tpu.dimension_semantics<parallel>, #tpu.dimension_semantics<arbitrary>], iteration_bounds = array<i64: 2, 2>, scalar_prefetch = 0 : i64, scratch_operands = 2 : i64, tpu.core_type = #tpu.core_type<tc>, window_params = [{transform_indices = @transform_0, window_bounds = array<i64: 256, 1>}, {transform_indices = @transform_1, window_bounds = array<i64: 256, 1>}, {transform_indices = @transform_2, window_bounds = array<i64: 1, 256>}, {transform_indices = @transform_3, window_bounds = array<i64: 1, 256>}, {transform_indices = @transform_4, window_bounds = array<i64: 1, 128>}, {transform_indices = @transform_5, window_bounds = array<i64: 1, 128>}]} {
    %c0_i32 = arith.constant 0 : i32
    %0 = arith.cmpi eq, %arg1, %c0_i32 : i32
    %1 = arith.extui %0 : i1 to i32
    %c0_i32_0 = arith.constant 0 : i32
    %2 = arith.cmpi ne, %1, %c0_i32_0 : i32
    scf.if %2 {
      %cst_22 = arith.constant 0.000000e+00 : f32
      %46 = vector.broadcast %cst_22 : f32 to vector<1x1xf32>
      %c0_23 = arith.constant 0 : index
      %c0_24 = arith.constant 0 : index
      %47 = vector.load %arg8[%c0_23, %c0_24] : memref<1x1xf32, #tpu.memory_space<vmem>>, vector<1x1xf32>
      tpu.vector_store %arg8[%c0_23, %c0_24], %46 {strides = array<i32>} : memref<1x1xf32, #tpu.memory_space<vmem>>, vector<1x1xf32>,
      %cst_25 = arith.constant 0.000000e+00 : f32
      %48 = vector.broadcast %cst_25 : f32 to vector<1x1xf32>
      %c0_26 = arith.constant 0 : index
      %c0_27 = arith.constant 0 : index
      %49 = vector.load %arg9[%c0_26, %c0_27] : memref<1x1xf32, #tpu.memory_space<vmem>>, vector<1x1xf32>
      tpu.vector_store %arg9[%c0_26, %c0_27], %48 {strides = array<i32>} : memref<1x1xf32, #tpu.memory_space<vmem>>, vector<1x1xf32>,
    } else {
    }
    %c0 = arith.constant 0 : index
    %c0_1 = arith.constant 0 : index
    %3 = vector.load %arg2[%c0, %c0_1] : memref<256x1xf32, #tpu.memory_space<vmem>>, vector<256x1xf32>
    %cst = arith.constant 2.000000e+01 : f32
    %4 = vector.broadcast %cst : f32 to vector<256x1xf32>
    %5 = arith.mulf %3, %4 : vector<256x1xf32>
    %c0_2 = arith.constant 0 : index
    %c0_3 = arith.constant 0 : index
    %6 = vector.load %arg4[%c0_2, %c0_3] : memref<1x256xf32, #tpu.memory_space<vmem>>, vector<1x256xf32>
    %cst_4 = arith.constant 2.000000e+01 : f32
    %7 = vector.broadcast %cst_4 : f32 to vector<1x256xf32>
    %8 = arith.mulf %6, %7 : vector<1x256xf32>
    %9 = vector.broadcast %5 : vector<256x1xf32> to vector<256x256xf32>
    %10 = vector.broadcast %8 : vector<1x256xf32> to vector<256x256xf32>
    %11 = arith.subf %9, %10 : vector<256x256xf32>
    %c0_5 = arith.constant 0 : index
    %c0_6 = arith.constant 0 : index
    %12 = vector.load %arg3[%c0_5, %c0_6] : memref<256x1xf32, #tpu.memory_space<vmem>>, vector<256x1xf32>
    %c0_7 = arith.constant 0 : index
    %c0_8 = arith.constant 0 : index
    %13 = vector.load %arg5[%c0_7, %c0_8] : memref<1x256xf32, #tpu.memory_space<vmem>>, vector<1x256xf32>
    %14 = vector.broadcast %12 : vector<256x1xf32> to vector<256x256xf32>
    %15 = vector.broadcast %13 : vector<1x256xf32> to vector<256x256xf32>
    %16 = arith.cmpf olt, %14, %15 : vector<256x256xf32>
    %cst_9 = arith.constant -1.000000e+30 : f32
    %17 = vector.broadcast %cst_9 : f32 to vector<256x256xf32>
    %18 = arith.select %16, %11, %17 : vector<256x256xi1>, vector<256x256xf32>
    %c0_10 = arith.constant 0 : index
    %c0_11 = arith.constant 0 : index
    %19 = vector.load %arg8[%c0_10, %c0_11] : memref<1x1xf32, #tpu.memory_space<vmem>>, vector<1x1xf32>
    %20 = vector.shape_cast %18 : vector<256x256xf32> to vector<1x256x256xf32>
    %cst_12 = arith.constant dense<0xFF800000> : vector<1xf32>
    %21 = vector.multi_reduction <maximumf>, %20, %cst_12 [1, 2] : vector<1x256x256xf32> to vector<1xf32>
    %22 = vector.shape_cast %21 : vector<1xf32> to vector<1x1x1xf32>
    %23 = vector.extract %22[0, 0, 0] : f32 from vector<1x1x1xf32>
    %24 = vector.broadcast %23 : f32 to vector<1x1xf32>
    %25 = arith.maximumf %19, %24 : vector<1x1xf32>
    %26 = vector.broadcast %25 : vector<1x1xf32> to vector<256x256xf32>
    %27 = arith.subf %18, %26 : vector<256x256xf32>
    %28 = math.exp %27 : vector<256x256xf32>
    %cst_13 = arith.constant dense<0.000000e+00> : vector<256xf32>
    %29 = vector.multi_reduction <add>, %28, %cst_13 [1] : vector<256x256xf32> to vector<256xf32>
    %30 = vector.shape_cast %29 : vector<256xf32> to vector<256x1xf32>
    %31 = vector.shape_cast %30 : vector<256x1xf32> to vector<1x256x1xf32>
    %cst_14 = arith.constant dense<0.000000e+00> : vector<1xf32>
    %32 = vector.multi_reduction <add>, %31, %cst_14 [1, 2] : vector<1x256x1xf32> to vector<1xf32>
    %33 = vector.shape_cast %32 : vector<1xf32> to vector<1x1x1xf32>
    %34 = vector.extract %33[0, 0, 0] : f32 from vector<1x1x1xf32>
    %c0_15 = arith.constant 0 : index
    %c0_16 = arith.constant 0 : index
    %35 = vector.load %arg9[%c0_15, %c0_16] : memref<1x1xf32, #tpu.memory_space<vmem>>, vector<1x1xf32>
    %36 = arith.subf %19, %25 : vector<1x1xf32>
    %37 = math.exp %36 : vector<1x1xf32>
    %38 = arith.mulf %35, %37 : vector<1x1xf32>
    %39 = vector.broadcast %34 : f32 to vector<1x1xf32>
    %40 = arith.addf %38, %39 : vector<1x1xf32>
    %c0_17 = arith.constant 0 : index
    %c0_18 = arith.constant 0 : index
    %41 = vector.load %arg9[%c0_17, %c0_18] : memref<1x1xf32, #tpu.memory_space<vmem>>, vector<1x1xf32>
    tpu.vector_store %arg9[%c0_17, %c0_18], %40 {strides = array<i32>} : memref<1x1xf32, #tpu.memory_space<vmem>>, vector<1x1xf32>,
    %c0_19 = arith.constant 0 : index
    %c0_20 = arith.constant 0 : index
    %42 = vector.load %arg8[%c0_19, %c0_20] : memref<1x1xf32, #tpu.memory_space<vmem>>, vector<1x1xf32>
    tpu.vector_store %arg8[%c0_19, %c0_20], %25 {strides = array<i32>} : memref<1x1xf32, #tpu.memory_space<vmem>>, vector<1x1xf32>,
    %c1_i32 = arith.constant 1 : i32
    %43 = arith.cmpi eq, %arg1, %c1_i32 : i32
    %44 = arith.extui %43 : i1 to i32
    %c0_i32_21 = arith.constant 0 : i32
    %45 = arith.cmpi ne, %44, %c0_i32_21 : i32
    scf.if %45 {
      %c0_22 = arith.constant 0 : index
      %c0_23 = arith.constant 0 : index
      %46 = vector.load %arg8[%c0_22, %c0_23] : memref<1x1xf32, #tpu.memory_space<vmem>>, vector<1x1xf32>
      %47 = vector.shape_cast %46 : vector<1x1xf32> to vector<1x1xf32>
      %48 = vector.broadcast %47 : vector<1x1xf32> to vector<1x128xf32>
      %c0_24 = arith.constant 0 : index
      %c0_25 = arith.constant 0 : index
      %49 = vector.load %arg6[%c0_24, %c0_25] : memref<1x128xf32, #tpu.memory_space<vmem>>, vector<1x128xf32>
      tpu.vector_store %arg6[%c0_24, %c0_25], %48 {strides = array<i32>} : memref<1x128xf32, #tpu.memory_space<vmem>>, vector<1x128xf32>,
      %c0_26 = arith.constant 0 : index
      %c0_27 = arith.constant 0 : index
      %50 = vector.load %arg9[%c0_26, %c0_27] : memref<1x1xf32, #tpu.memory_space<vmem>>, vector<1x1xf32>
      %51 = vector.shape_cast %50 : vector<1x1xf32> to vector<1x1xf32>
      %52 = vector.broadcast %51 : vector<1x1xf32> to vector<1x128xf32>
      %c0_28 = arith.constant 0 : index
      %c0_29 = arith.constant 0 : index
      %53 = vector.load %arg7[%c0_28, %c0_29] : memref<1x128xf32, #tpu.memory_space<vmem>>, vector<1x128xf32>
      tpu.vector_store %arg7[%c0_28, %c0_29], %52 {strides = array<i32>} : memref<1x128xf32, #tpu.memory_space<vmem>>, vector<1x128xf32>,
    } else {
    }
    return
  }
  func.func @transform_0(%arg0: i32, %arg1: i32) -> (i32, i32) {
    %c0_i32 = arith.constant 0 : i32
    %c0_i32_0 = arith.constant 0 : i32
    return %arg0, %c0_i32 : i32, i32
  }
  func.func @transform_1(%arg0: i32, %arg1: i32) -> (i32, i32) {
    %c0_i32 = arith.constant 0 : i32
    %c0_i32_0 = arith.constant 0 : i32
    return %arg0, %c0_i32 : i32, i32
  }
  func.func @transform_2(%arg0: i32, %arg1: i32) -> (i32, i32) {
    %c0_i32 = arith.constant 0 : i32
    %c0_i32_0 = arith.constant 0 : i32
    return %c0_i32, %arg1 : i32, i32
  }
  func.func @transform_3(%arg0: i32, %arg1: i32) -> (i32, i32) {
    %c0_i32 = arith.constant 0 : i32
    %c0_i32_0 = arith.constant 0 : i32
    return %c0_i32, %arg1 : i32, i32
  }
  func.func @transform_4(%arg0: i32, %arg1: i32) -> (i32, i32) {
    %c0_i32 = arith.constant 0 : i32
    %c0_i32_0 = arith.constant 0 : i32
    return %c0_i32, %arg0 : i32, i32
  }
  func.func @transform_5(%arg0: i32, %arg1: i32) -> (i32, i32) {
    %c0_i32 = arith.constant 0 : i32
    %c0_i32_0 = arith.constant 0 : i32
    return %c0_i32, %arg0 : i32, i32
  }
}

</mosaic_0001>

<bundles_post_ra>
// kernel: tpu_custom_call.1
= control target key start
LH: loop header
LB: loop body
LE: loop exit
PB: predicated region body
PF: predicated region fallthrough
CT: control target
= control target key end

     0   :  { %11 = vsyncpa [#allocation5], 0  ;;  %s2867_s0 = inlined_call_operand.vmem [shape: f32[512,1], index: 0, kind: input, shape index: {}]   ;;  %s2868_s1 = inlined_call_operand.vmem [shape: f32[512,1], index: 1, kind: input, shape index: {}]   ;;  %s2869_s2 = inlined_call_operand.vmem [shape: f32[1,512], index: 2, kind: input, shape index: {}]   ;;  %s2870_s3 = inlined_call_operand.vmem [shape: f32[1,512], index: 3, kind: input, shape index: {}]   ;;  %s2871_s4 = inlined_call_operand.hbm [shape: f32[1,256], index: 4, kind: output, shape index: {0}]   ;;  %s2872_s5 = inlined_call_operand.hbm [shape: f32[1,256], index: 5, kind: output, shape index: {1}]  }
   0x1   :  { %13 = vsyncpa [#allocation5 + $0x1], 0 }
   0x2   :  { %14 = vsyncpa [#allocation7], 0 }
   0x3   :  { %16 = vsyncpa [#allocation7 + $0x1], 0  ;;  %s1977_s18 = smov 0   ;;  %s1979_s19 = smov 0  }
   0x4   :  { %s1981_s20 = smov 0   ;;  %s1983_s21 = smov 0  }
   0x5   :  { %s1985_s22 = smov 0   ;;  %s1987_s23 = smov 0  }
   0x6   :  { %s1989_s24 = smov 0   ;;  %s1991_s25 = smov 0  }
   0x7 LB: > { %2896 = sst [smem:[#allocation10_spill]] %s1932_s23  ;;  %s1581_s26 = sadd.s32 4294967295, %s1940_s25   ;;  %s1940_s25 = sphi %s1991_s25, %s22_s25   ;;  %s1936_s24 = sphi %s1989_s24, %s2947_s24   ;;  %s1932_s23 = sphi %s1987_s23, %s2946_s23   ;;  %s1928_s22 = sphi %s1985_s22, %s2945_s22   ;;  %s1924_s21 = sphi %s1983_s21, %s2944_s21   ;;  %s1920_s20 = sphi %s1981_s20, %s2950_s20   ;;  %s1916_s19 = sphi %s1979_s19, %s2949_s19   ;;  %s1912_s18 = sphi %s1977_s18, %s2948_s18  }
   0x8   : > { %2897 = sst [smem:[#allocation11_spill]] %s1936_s24  ;;  %s1582_s27 = sadd.s32 4294967294, %s1940_s25  }
   0x9   : > { %s31_s28 = sadd.s32 1, %s1932_s23  ;;  %s34_s29 = sadd.s32 1, %s1936_s24 }
   0xa   : > { %p32_p0 = scmp.ge.s32.totalorder %s31_s28, 2  ;;  %p155_p1 = scmp.ne.s32.totalorder %s1920_s20, %s1916_s19 }
   0xb   : > { %p156_p2 = scmp.eq.s32.totalorder %s1581_s26, 3  ;;  %p161_p4 = scmp.ne.s32.totalorder %s1916_s19, %s1912_s18 }
   0xc   : > { %s2952_s28 = smov (%p32_p0, %s31_s28), 0  ;;  %s2954_s29 = smov (!%p32_p0, %s34_s29), %s1936_s24 }
   0xd   : > { %2898 = sst [smem:[#allocation12_spill]] %s2952_s28  ;;  %p2026_p3 = por %p156_p2, %p155_p1 }
   0xe   : > { %p36_p5 = scmp.ge.s32.totalorder %s2954_s29, 2  ;;  %p162_p6 = scmp.eq.s32.totalorder %s1582_s27, 3 }
   0xf   : > { %p1585_p7 = scmp.ge.s32.totalorder %s1940_s25, 1  ;;  %p240_p8 = scmp.lt.s32.totalorder %s1940_s25, 5 }
  0x10   : > { %s2956_s29 = smov (%p36_p5, %s2954_s29), 0  ;;  %p2036_p9 = por %p162_p6, %p161_p4 }
  0x11   : > { %2900 = sst [smem:[#allocation13_spill]] %s2956_s29  ;;  %p241_p10 = pnand %p1585_p7, %p240_p8 }
  0x12   : > { %s142_s7 = ssub.s32 %s1936_s24, %s2956_s29  ;;  %s145_s8 = sadd.s32 1, %s1920_s20 }
  0x13   : > { %p143_p11 = scmp.eq.s32.totalorder %s142_s7, 0  ;;  %244 = sbr.rel (%p241_p10) target bundleno = 1262 (0x4ee), region = 36 }
  0x15   : > { %s2044_s9 = scalar_select %p143_p11, %s1920_s20, %s145_s8  }
  0x17   : > { %2902 = sst [smem:[#allocation14_spill]] %s2044_s9 }
  0x1a   : > { %s2047_s10 = sand.u32 1, %s1916_s19   ;;  %s1586_s11 = sshll.u32 %s1928_s22, 5 }
  0x1b   : > { %p285_p12 = scmp.lt.s32.totalorder %s1586_s11, 63  ;;  %s1590_s12 = sshll.u32 %s1924_s21, 1 }
  0x1c   : > { %p297_p13 = scmp.lt.s32.totalorder %s1590_s12, 3  ;;  %s277_s9 = scalar_lea.vmem [#allocation4], %s2047_s10 }
  0x1d   : > { %s2958_s11 = smov (!%p285_p12, %s1586_s11), 63  ;;  %p1592_p0 = scmp.ne.s32.totalorder %s1924_s21, 0 }
  0x1e   : > { %s2960_s12 = smov (!%p297_p13, %s1590_s12), 3  ;;  %s1587_s13 = sshll.u32 %s2958_s11, 3  ;;  %vm310_vm0 = vcmask (!%p1592_p0), 0   ;;  %v1942_v0 = vmov (!%p1592_p0), 0.0  }
  0x1f   : > { %s2056_s16 = scalar_lea.vmem %s2867_s0, %s1587_s13  ;;  %s2061_s27 = scalar_lea.vmem %s2868_s1, %s1587_s13  ;;  %311 = vst.msk [vmem:[#allocation2] sm:$0x1] (!%p1592_p0), %vm310_vm0, %v1942_v0  ;;  %312 = vst.msk [vmem:[#allocation3] sm:$0x1] (!%p1592_p0), %vm310_vm0, %v1942_v0 }
  0x20   : > { %s299_s29 = scalar_lea.vmem %s2869_s2, %s2960_s12  ;;  %s304_s23 = scalar_lea.vmem %s2870_s3, %s2960_s12 }
  0x21   : > { %s283_s11 = scalar_lea.vmem [#allocation6], %s2047_s10  ;;  %309 = sbr.rel (%p1592_p0) target bundleno = 40 (0x28), region = 40 }
  0x28 PF: > { %v315_v1 = vld [vmem:[%s2056_s16 + $0x10] sm:$0xff]  ;;  %v313_v2 = vld [vmem:[%s2056_s16] sm:$0xff]  ;;  %v316_v3 = vld [vmem:[%s2056_s16 + $0x18] sm:$0xff]  ;;  %v1943_v4 = vmov 0   ;;  %p1593_p1 = scmp.ne.s32.totalorder %s1924_s21, 1 }
  0x29   : > { %1682 = vset.pattern.permute.xlu1 %v1943_v4  ;;  %1681 = vset.pattern.permute.xlu0 %v1943_v4  ;;  %v347_v5 = vmul.f32 20.0, %v315_v1  ;;  %v345_v6 = vmul.f32 20.0, %v313_v2  ;;  %v314_v7 = vld [vmem:[%s2056_s16 + $0x8] sm:$0xff]  ;;  %v348_v8 = vmul.f32 20.0, %v316_v3  ;;  %v614_v11 = vld [vmem:[%s2061_s27] sm:$0xff]  ;;  %v617_v12 = vld [vmem:[%s2061_s27 + $0x18] sm:$0xff] }
  0x2a   : > { %v346_v9 = vmul.f32 20.0, %v314_v7  ;;  %v615_v10 = vld [vmem:[%s2061_s27 + $0x8] sm:$0xff]  ;;  %v616_v13 = vld [vmem:[%s2061_s27 + $0x10] sm:$0xff]  ;;  %v317_v15 = vld [vmem:[%s2056_s16 + $0x20] sm:$0xff] }
  0x2b   : > { %391 = vperm.xlu1 %1682, %v347_v5   ;;  %381 = vperm.xlu0 %1681, %v345_v6   ;;  %v318_v14 = vld [vmem:[%s2056_s16 + $0x28] sm:$0xff]  ;;  %v349_v17 = vmul.f32 20.0, %v317_v15  ;;  %v618_v19 = vld [vmem:[%s2061_s27 + $0x20] sm:$0xff]  ;;  %v320_v20 = vld [vmem:[%s2056_s16 + $0x38] sm:$0xff] }
  0x2c   : > { %v350_v16 = vmul.f32 20.0, %v318_v14  ;;  %v619_v18 = vld [vmem:[%s2061_s27 + $0x28] sm:$0xff]  ;;  %v319_v21 = vld [vmem:[%s2056_s16 + $0x30] sm:$0xff]  ;;  %v352_v22 = vmul.f32 20.0, %v320_v20  ;;  %v621_v24 = vld [vmem:[%s2061_s27 + $0x38] sm:$0xff] }
  0x2d   : > { %v351_v23 = vmul.f32 20.0, %v319_v21  ;;  %v620_v25 = vld [vmem:[%s2061_s27 + $0x30] sm:$0xff]  ;;  %v322_v26 = vld [vmem:[%s2056_s16 + $0x48] sm:$0xff]  ;;  %v321_v27 = vld [vmem:[%s2056_s16 + $0x40] sm:$0xff] }
  0x2e   : > { %v354_v28 = vmul.f32 20.0, %v322_v26  ;;  %v353_v29 = vmul.f32 20.0, %v321_v27  ;;  %v623_v30 = vld [vmem:[%s2061_s27 + $0x48] sm:$0xff]  ;;  %v622_v31 = vld [vmem:[%s2061_s27 + $0x40] sm:$0xff]  ;;  %v324_v32 = vld [vmem:[%s2056_s16 + $0x58] sm:$0xff] }
  0x2f   : > { %396 = vperm.xlu1 %1682, %v348_v8   ;;  %386 = vperm.xlu0 %1681, %v346_v9   ;;  %v323_v33 = vld [vmem:[%s2056_s16 + $0x50] sm:$0xff]  ;;  %v356_v34 = vmul.f32 20.0, %v324_v32  ;;  %v625_v36 = vld [vmem:[%s2061_s27 + $0x58] sm:$0xff]  ;;  %v326_v38 = vld [vmem:[%s2056_s16 + $0x68] sm:$0xff] }
  0x30   : > { %v355_v35 = vmul.f32 20.0, %v323_v33  ;;  %v624_v37 = vld [vmem:[%s2061_s27 + $0x50] sm:$0xff]  ;;  %v325_v39 = vld [vmem:[%s2056_s16 + $0x60] sm:$0xff]  ;;  %v358_v40 = vmul.f32 20.0, %v326_v38  ;;  %v627_v42 = vld [vmem:[%s2061_s27 + $0x68] sm:$0xff] }
  0x31   : > { %v357_v41 = vmul.f32 20.0, %v325_v39  ;;  %v626_v43 = vld [vmem:[%s2061_s27 + $0x60] sm:$0xff]  ;;  %v328_v44 = vld [vmem:[%s2056_s16 + $0x78] sm:$0xff]  ;;  %v327_v45 = vld [vmem:[%s2056_s16 + $0x70] sm:$0xff] }
  0x32   : > { %v360_v46 = vmul.f32 20.0, %v328_v44  ;;  %v359_v47 = vmul.f32 20.0, %v327_v45  ;;  %v629_v48 = vld [vmem:[%s2061_s27 + $0x78] sm:$0xff]  ;;  %v628_v49 = vld [vmem:[%s2061_s27 + $0x70] sm:$0xff]  ;;  %v330_v50 = vld [vmem:[%s2056_s16 + $0x88] sm:$0xff] }
  0x33   : > { %654 = vperm.xlu1 %1682, %v615_v10   ;;  %649 = vperm.xlu0 %1681, %v614_v11   ;;  %v329_v51 = vld [vmem:[%s2056_s16 + $0x80] sm:$0xff]  ;;  %v362_v52 = vmul.f32 20.0, %v330_v50  ;;  %v631_v54 = vld [vmem:[%s2061_s27 + $0x88] sm:$0xff]  ;;  %v332_v56 = vld [vmem:[%s2056_s16 + $0x98] sm:$0xff] }
  0x34   : > { %v361_v53 = vmul.f32 20.0, %v329_v51  ;;  %v630_v55 = vld [vmem:[%s2061_s27 + $0x80] sm:$0xff]  ;;  %v331_v57 = vld [vmem:[%s2056_s16 + $0x90] sm:$0xff]  ;;  %v364_v58 = vmul.f32 20.0, %v332_v56  ;;  %v633_v60 = vld [vmem:[%s2061_s27 + $0x98] sm:$0xff] }
  0x35   : > { %v363_v59 = vmul.f32 20.0, %v331_v57  ;;  %v632_v61 = vld [vmem:[%s2061_s27 + $0x90] sm:$0xff]  ;;  %v334_v62 = vld [vmem:[%s2056_s16 + $0xa8] sm:$0xff]  ;;  %v333_v63 = vld [vmem:[%s2056_s16 + $0xa0] sm:$0xff] }
  0x36   : > { %v366_v0 = vmul.f32 20.0, %v334_v62  ;;  %v365_v1 = vmul.f32 20.0, %v333_v63  ;;  %v635_v2 = vld [vmem:[%s2061_s27 + $0xa8] sm:$0xff]  ;;  %v634_v3 = vld [vmem:[%s2061_s27 + $0xa0] sm:$0xff]  ;;  %v336_v4 = vld [vmem:[%s2056_s16 + $0xb8] sm:$0xff] }
  0x37   : > { %664 = vperm.xlu1 %1682, %v617_v12   ;;  %659 = vperm.xlu0 %1681, %v616_v13   ;;  %v335_v5 = vld [vmem:[%s2056_s16 + $0xb0] sm:$0xff]  ;;  %v368_v6 = vmul.f32 20.0, %v336_v4  ;;  %v637_v8 = vld [vmem:[%s2061_s27 + $0xb8] sm:$0xff]  ;;  %v338_v10 = vld [vmem:[%s2056_s16 + $0xc8] sm:$0xff] }
  0x38   : > { %v367_v7 = vmul.f32 20.0, %v335_v5  ;;  %v636_v9 = vld [vmem:[%s2061_s27 + $0xb0] sm:$0xff]  ;;  %v337_v11 = vld [vmem:[%s2056_s16 + $0xc0] sm:$0xff]  ;;  %v370_v12 = vmul.f32 20.0, %v338_v10  ;;  %v639_v14 = vld [vmem:[%s2061_s27 + $0xc8] sm:$0xff] }
  0x39   : > { %v369_v13 = vmul.f32 20.0, %v337_v11  ;;  %v638_v15 = vld [vmem:[%s2061_s27 + $0xc0] sm:$0xff]  ;;  %v641_v20 = vld [vmem:[%s2061_s27 + $0xd8] sm:$0xff]  ;;  %v640_v21 = vld [vmem:[%s2061_s27 + $0xd0] sm:$0xff] }
  0x3a   : > { %v643_v26 = vld [vmem:[%s2061_s27 + $0xe8] sm:$0xff]  ;;  %v642_v27 = vld [vmem:[%s2061_s27 + $0xe0] sm:$0xff]  ;;  %v645_v32 = vld [vmem:[%s2061_s27 + $0xf8] sm:$0xff] }
  0x3b   : > { %406 = vperm.xlu1 %1682, %v350_v16   ;;  %401 = vperm.xlu0 %1681, %v349_v17   ;;  %v340_v16 = vld [vmem:[%s2056_s16 + $0xd8] sm:$0xff]  ;;  %v339_v17 = vld [vmem:[%s2056_s16 + $0xd0] sm:$0xff] }
  0x3c   : > { %v644_v33 = vld [vmem:[%s2061_s27 + $0xf0] sm:$0xff] }
  0x3f   : > { %674 = vperm.xlu1 %1682, %v619_v18   ;;  %669 = vperm.xlu0 %1681, %v618_v19   ;;  %v372_v18 = vmul.f32 20.0, %v340_v16  ;;  %v371_v19 = vmul.f32 20.0, %v339_v17 }
  0x43   : > { %416 = vperm.xlu1 %1682, %v352_v22   ;;  %411 = vperm.xlu0 %1681, %v351_v23   ;;  %v342_v22 = vld [vmem:[%s2056_s16 + $0xe8] sm:$0xff]  ;;  %v341_v23 = vld [vmem:[%s2056_s16 + $0xe0] sm:$0xff] }
  0x47   : > { %684 = vperm.xlu1 %1682, %v621_v24   ;;  %679 = vperm.xlu0 %1681, %v620_v25   ;;  %v374_v24 = vmul.f32 20.0, %v342_v22  ;;  %v373_v25 = vmul.f32 20.0, %v341_v23 }
  0x4b   : > { %426 = vperm.xlu1 %1682, %v354_v28   ;;  %421 = vperm.xlu0 %1681, %v353_v29   ;;  %v344_v28 = vld [vmem:[%s2056_s16 + $0xf8] sm:$0xff]  ;;  %v343_v29 = vld [vmem:[%s2056_s16 + $0xf0] sm:$0xff] }
  0x4f   : > { %694 = vperm.xlu1 %1682, %v623_v30   ;;  %689 = vperm.xlu0 %1681, %v622_v31   ;;  %v376_v30 = vmul.f32 20.0, %v344_v28  ;;  %v375_v31 = vmul.f32 20.0, %v343_v29 }
  0x53   : > { %436 = vperm.xlu1 %1682, %v356_v34   ;;  %431 = vperm.xlu0 %1681, %v355_v35   ;;  %v540_v34 = vlaneseq }
  0x55   : > { %v541_v35 = vshrl.u32 %v540_v34, 7 }
  0x57   : > { %704 = vperm.xlu1 %1682, %v625_v36   ;;  %699 = vperm.xlu0 %1681, %v624_v37   ;;  %v377_v36 = vld [vmem:[%s299_s29] sm:$0x3] }
  0x58   : > { %v378_v39 = vmul.f32 20.0, %v377_v36 }
  0x5b   : > { %446 = vperm.xlu1 %1682, %v358_v40   ;;  %441 = vperm.xlu0 %1681, %v357_v41   ;;  %v2145_v40 = vsub.s32 0, %v541_v35  ;;  %v546_v41 = vsub.s32 1, %v541_v35 }
  0x5f   : > { %714 = vperm.xlu1 %1682, %v627_v42   ;;  %709 = vperm.xlu0 %1681, %v626_v43   ;;  %v646_v42 = vld [vmem:[%s304_s23] sm:$0x3] }
  0x60   : > { %v2153_v45 = vrot.slane %v646_v42, %v2145_v40 }
  0x63   : > { %456 = vperm.xlu1 %1682, %v360_v46   ;;  %451 = vperm.xlu0 %1681, %v359_v47   ;;  %v2155_v46 = vrot.slane %v646_v42, %v546_v41  ;;  %v2158_v47 = vrot.slane %v378_v39, %v2145_v40 }
  0x67   : > { %724 = vperm.xlu1 %1682, %v629_v48   ;;  %719 = vperm.xlu0 %1681, %v628_v49   ;;  %v2160_v48 = vrot.slane %v378_v39, %v546_v41 }
  0x6b   : > { %466 = vperm.xlu1 %1682, %v362_v52   ;;  %461 = vperm.xlu0 %1681, %v361_v53  }
  0x6f   : > { %734 = vperm.xlu1 %1682, %v631_v54   ;;  %729 = vperm.xlu0 %1681, %v630_v55  }
  0x73   : > { %476 = vperm.xlu1 %1682, %v364_v58   ;;  %471 = vperm.xlu0 %1681, %v363_v59  }
  0x77   : > { %744 = vperm.xlu1 %1682, %v633_v60   ;;  %739 = vperm.xlu0 %1681, %v632_v61  }
  0x7b   : > { %486 = vperm.xlu1 %1682, %v366_v0   ;;  %481 = vperm.xlu0 %1681, %v365_v1  }
  0x7f   : > { %754 = vperm.xlu1 %1682, %v635_v2   ;;  %749 = vperm.xlu0 %1681, %v634_v3  }
  0x83   : > { %496 = vperm.xlu1 %1682, %v368_v6   ;;  %491 = vperm.xlu0 %1681, %v367_v7  }
  0x87   : > { %764 = vperm.xlu1 %1682, %v637_v8   ;;  %759 = vperm.xlu0 %1681, %v636_v9  }
  0x8b   : > { %506 = vperm.xlu1 %1682, %v370_v12   ;;  %501 = vperm.xlu0 %1681, %v369_v13  }
  0x8f   : > { %774 = vperm.xlu1 %1682, %v639_v14   ;;  %769 = vperm.xlu0 %1681, %v638_v15  }
  0x93   : > { %516 = vperm.xlu1 %1682, %v372_v18   ;;  %511 = vperm.xlu0 %1681, %v371_v19  }
  0x97   : > { %784 = vperm.xlu1 %1682, %v641_v20   ;;  %779 = vperm.xlu0 %1681, %v640_v21  }
  0x9b   : > { %526 = vperm.xlu1 %1682, %v374_v24   ;;  %521 = vperm.xlu0 %1681, %v373_v25  }
  0x9f   : > { %794 = vperm.xlu1 %1682, %v643_v26   ;;  %789 = vperm.xlu0 %1681, %v642_v27  }
  0xa3   : > { %536 = vperm.xlu1 %1682, %v376_v30   ;;  %531 = vperm.xlu0 %1681, %v375_v31  }
  0xa7   : > { %804 = vperm.xlu1 %1682, %v645_v32   ;;  %799 = vperm.xlu0 %1681, %v644_v33  }
  0xaa   : > { %v392_v37 = vpop.permute.xlu1 %391  ;;  %v2143_v38 = vpop.permute.xlu0 %381 }
  0xab   : > { %v554_v55 = vsub.f32 %v392_v37, %v2158_v47  ;;  %v555_v56 = vsub.f32 %v392_v37, %v2160_v48 }
  0xae   : > { %v397_v43 = vpop.permute.xlu1 %396  ;;  %v387_v44 = vpop.permute.xlu0 %386 }
  0xaf   : > { %v552_v49 = vsub.f32 %v387_v44, %v2158_v47  ;;  %v553_v50 = vsub.f32 %v387_v44, %v2160_v48  ;;  %v556_v57 = vsub.f32 %v397_v43, %v2158_v47  ;;  %v557_v58 = vsub.f32 %v397_v43, %v2160_v48 }
  0xb2   : > { %v655_v51 = vpop.permute.xlu1 %654  ;;  %v2164_v52 = vpop.permute.xlu0 %649 }
  0xb3   : > { %vm820_vm1 = vcmp.lt.f32.partialorder %v655_v51, %v2153_v45  ;;  %vm821_vm2 = vcmp.lt.f32.partialorder %v655_v51, %v2155_v46 }
  0xb4   : > { %v2168_v53 = vsel %vm820_vm1, %v552_v49, -1e+30  ;;  %v2170_v54 = vsel %vm821_vm2, %v553_v50, -1e+30 }
  0xb6   : > { %v665_v59 = vpop.permute.xlu1 %664  ;;  %v660_v60 = vpop.permute.xlu0 %659 }
  0xb7   : > { %vm824_vm3 = vcmp.lt.f32.partialorder %v665_v59, %v2153_v45  ;;  %vm825_vm4 = vcmp.lt.f32.partialorder %v665_v59, %v2155_v46  ;;  %vm822_vm5 = vcmp.lt.f32.partialorder %v660_v60, %v2153_v45  ;;  %vm823_vm6 = vcmp.lt.f32.partialorder %v660_v60, %v2155_v46 }
  0xb8   : > { %v2180_v61 = vsel %vm824_vm3, %v556_v57, -1e+30  ;;  %v2182_v62 = vsel %vm825_vm4, %v557_v58, -1e+30  ;;  %v2184_v63 = vsel %vm822_vm5, %v554_v55, -1e+30  ;;  %vm818_vm3 = vcmp.lt.f32.partialorder %v2164_v52, %v2153_v45 }
  0xb9   : > { %v2186_v0 = vsel %vm823_vm6, %v555_v56, -1e+30  ;;  %vm819_vm4 = vcmp.lt.f32.partialorder %v2164_v52, %v2155_v46  ;;  %v950_v52 = vmax.f32 %v2170_v54, %v2182_v62 }
  0xba   : > { %v407_v1 = vpop.permute.xlu1 %406  ;;  %v402_v2 = vpop.permute.xlu0 %401 }
  0xbb   : > { %v560_v3 = vsub.f32 %v407_v1, %v2158_v47  ;;  %v561_v4 = vsub.f32 %v407_v1, %v2160_v48  ;;  %v558_v5 = vsub.f32 %v402_v2, %v2158_v47  ;;  %v559_v6 = vsub.f32 %v402_v2, %v2160_v48 }
  0xbe   : > { %v675_v7 = vpop.permute.xlu1 %674  ;;  %v670_v8 = vpop.permute.xlu0 %669 }
  0xbf   : > { %vm828_vm7 = vcmp.lt.f32.partialorder %v675_v7, %v2153_v45  ;;  %vm829_vm8 = vcmp.lt.f32.partialorder %v675_v7, %v2155_v46  ;;  %vm826_vm9 = vcmp.lt.f32.partialorder %v670_v8, %v2153_v45  ;;  %vm827_vm10 = vcmp.lt.f32.partialorder %v670_v8, %v2155_v46 }
  0xc0   : > { %v2196_v9 = vsel %vm828_vm7, %v560_v3, -1e+30  ;;  %v2198_v10 = vsel %vm829_vm8, %v561_v4, -1e+30  ;;  %v2200_v11 = vsel %vm826_vm9, %v558_v5, -1e+30  ;;  %v550_v4 = vsub.f32 %v2143_v38, %v2158_v47 }
  0xc1   : > { %v2202_v12 = vsel %vm827_vm10, %v559_v6, -1e+30  ;;  %v551_v5 = vsub.f32 %v2143_v38, %v2160_v48 }
  0xc2   : > { %v417_v13 = vpop.permute.xlu1 %416  ;;  %v412_v14 = vpop.permute.xlu0 %411  ;;  %v2276_v8 = vsel %vm818_vm3, %v550_v4, -1e+30 }
  0xc3   : > { %v564_v15 = vsub.f32 %v417_v13, %v2158_v47  ;;  %v565_v16 = vsub.f32 %v417_v13, %v2160_v48  ;;  %v562_v17 = vsub.f32 %v412_v14, %v2158_v47  ;;  %v563_v18 = vsub.f32 %v412_v14, %v2160_v48 }
  0xc4   : > { %v2278_v13 = vsel %vm819_vm4, %v551_v5, -1e+30  ;;  %v949_v14 = vmax.f32 %v2168_v53, %v2180_v61 }
  0xc5   : > { %v948_v38 = vmax.f32 %v2278_v13, %v2186_v0 }
  0xc6   : > { %v685_v19 = vpop.permute.xlu1 %684  ;;  %v680_v20 = vpop.permute.xlu0 %679 }
  0xc7   : > { %vm832_vm11 = vcmp.lt.f32.partialorder %v685_v19, %v2153_v45  ;;  %vm833_vm12 = vcmp.lt.f32.partialorder %v685_v19, %v2155_v46  ;;  %vm830_vm13 = vcmp.lt.f32.partialorder %v680_v20, %v2153_v45  ;;  %vm831_vm14 = vcmp.lt.f32.partialorder %v680_v20, %v2155_v46 }
  0xc8   : > { %v2212_v21 = vsel %vm832_vm11, %v564_v15, -1e+30  ;;  %v2214_v22 = vsel %vm833_vm12, %v565_v16, -1e+30  ;;  %v2216_v23 = vsel %vm830_vm13, %v562_v17, -1e+30  ;;  %v947_v15 = vmax.f32 %v2276_v8, %v2184_v63 }
  0xc9   : > { %v2218_v24 = vsel %vm831_vm14, %v563_v18, -1e+30  ;;  %v953_v16 = vmax.f32 %v949_v14, %v2196_v9  ;;  %v954_v17 = vmax.f32 %v950_v52, %v2198_v10  ;;  %v952_v19 = vmax.f32 %v948_v38, %v2202_v12 }
  0xca   : > { %v427_v25 = vpop.permute.xlu1 %426  ;;  %v422_v26 = vpop.permute.xlu0 %421  ;;  %v951_v18 = vmax.f32 %v947_v15, %v2200_v11 }
  0xcb   : > { %v568_v27 = vsub.f32 %v427_v25, %v2158_v47  ;;  %v569_v28 = vsub.f32 %v427_v25, %v2160_v48  ;;  %v566_v29 = vsub.f32 %v422_v26, %v2158_v47  ;;  %v567_v30 = vsub.f32 %v422_v26, %v2160_v48 }
  0xce   : > { %v695_v31 = vpop.permute.xlu1 %694  ;;  %v690_v32 = vpop.permute.xlu0 %689 }
  0xcf   : > { %vm836_vm15 = vcmp.lt.f32.partialorder %v695_v31, %v2153_v45  ;;  %vm837_vm0 = vcmp.lt.f32.partialorder %v695_v31, %v2155_v46  ;;  %vm834_vm1 = vcmp.lt.f32.partialorder %v690_v32, %v2153_v45  ;;  %vm835_vm2 = vcmp.lt.f32.partialorder %v690_v32, %v2155_v46 }
  0xd0   : > { %v2228_v33 = vsel %vm836_vm15, %v568_v27, -1e+30  ;;  %v2230_v34 = vsel %vm837_vm0, %v569_v28, -1e+30  ;;  %v2232_v35 = vsel %vm834_vm1, %v566_v29, -1e+30  ;;  %v957_v27 = vmax.f32 %v953_v16, %v2212_v21 }
  0xd1   : > { %v2234_v36 = vsel %vm835_vm2, %v567_v30, -1e+30  ;;  %v958_v28 = vmax.f32 %v954_v17, %v2214_v22  ;;  %v955_v30 = vmax.f32 %v951_v18, %v2216_v23  ;;  %v956_v31 = vmax.f32 %v952_v19, %v2218_v24 }
  0xd2   : > { %v437_v37 = vpop.permute.xlu1 %436  ;;  %v432_v39 = vpop.permute.xlu0 %431 }
  0xd3   : > { %v572_v20 = vsub.f32 %v437_v37, %v2158_v47  ;;  %v573_v29 = vsub.f32 %v437_v37, %v2160_v48  ;;  %v570_v4 = vsub.f32 %v432_v39, %v2158_v47  ;;  %v962_v14 = vmax.f32 %v958_v28, %v2230_v34 }
  0xd4   : > { %v571_v37 = vsub.f32 %v432_v39, %v2160_v48  ;;  %v959_v38 = vmax.f32 %v955_v30, %v2232_v35  ;;  %v960_v16 = vmax.f32 %v956_v31, %v2234_v36 }
  0xd6   : > { %v705_v41 = vpop.permute.xlu1 %704  ;;  %v700_v42 = vpop.permute.xlu0 %699 }
  0xd7   : > { %vm840_vm5 = vcmp.lt.f32.partialorder %v705_v41, %v2153_v45  ;;  %vm841_vm6 = vcmp.lt.f32.partialorder %v705_v41, %v2155_v46  ;;  %vm838_vm7 = vcmp.lt.f32.partialorder %v700_v42, %v2153_v45  ;;  %v961_v41 = vmax.f32 %v957_v27, %v2228_v33 }
  0xd8   : > { %v2304_v32 = vsel %vm840_vm5, %v572_v20, -1e+30  ;;  %v2309_v5 = vsel %vm841_vm6, %v573_v29, -1e+30  ;;  %vm839_vm8 = vcmp.lt.f32.partialorder %v700_v42, %v2155_v46  ;;  %v2321_v18 = vsel %vm838_vm7, %v570_v4, -1e+30 }
  0xd9   : > { %2903 = vst [vmem:[#allocation15_spill] sm:$0xff] %v2309_v5  ;;  %v965_v17 = vmax.f32 %v961_v41, %v2304_v32  ;;  %v966_v19 = vmax.f32 %v962_v14, %v2309_v5  ;;  %v2324_v20 = vsel %vm839_vm8, %v571_v37, -1e+30  ;;  %v963_v27 = vmax.f32 %v959_v38, %v2321_v18 }
  0xda   : > { %v2236_v43 = vpop.permute.xlu1 %446  ;;  %v2238_v44 = vpop.permute.xlu0 %441  ;;  %v964_v30 = vmax.f32 %v960_v16, %v2324_v20 }
  0xdb   : > { %v576_v39 = vsub.f32 %v2236_v43, %v2158_v47  ;;  %v577_v42 = vsub.f32 %v2236_v43, %v2160_v48  ;;  %v574_v28 = vsub.f32 %v2238_v44, %v2158_v47 }
  0xde   : > { %v2240_v49 = vpop.permute.xlu1 %714  ;;  %v2242_v50 = vpop.permute.xlu0 %709 }
  0xdf   : > { %vm844_vm9 = vcmp.lt.f32.partialorder %v2240_v49, %v2153_v45  ;;  %vm845_vm10 = vcmp.lt.f32.partialorder %v2240_v49, %v2155_v46  ;;  %vm842_vm11 = vcmp.lt.f32.partialorder %v2242_v50, %v2153_v45  ;;  %vm843_vm12 = vcmp.lt.f32.partialorder %v2242_v50, %v2155_v46 }
  0xe0   : > { %v575_v49 = vsub.f32 %v2238_v44, %v2160_v48  ;;  %v2350_v31 = vsel %vm844_vm9, %v576_v39, -1e+30  ;;  %v2352_v50 = vsel %vm845_vm10, %v577_v42, -1e+30  ;;  %v2356_v4 = vsel %vm842_vm11, %v574_v28, -1e+30 }
  0xe1   : > { %2904 = vst [vmem:[#allocation16_spill] sm:$0xff] %v2350_v31  ;;  %2905 = vst [vmem:[#allocation17_spill] sm:$0xff] %v2352_v50  ;;  %v969_v16 = vmax.f32 %v965_v17, %v2350_v31  ;;  %v970_v39 = vmax.f32 %v966_v19, %v2352_v50 }
  0xe2   : > { %v2244_v51 = vpop.permute.xlu1 %456  ;;  %v2246_v55 = vpop.permute.xlu0 %451  ;;  %v2358_v14 = vsel %vm843_vm12, %v575_v49, -1e+30 }
  0xe3   : > { %v580_v41 = vsub.f32 %v2244_v51, %v2158_v47  ;;  %v581_v44 = vsub.f32 %v2244_v51, %v2160_v48  ;;  %v578_v37 = vsub.f32 %v2246_v55, %v2158_v47  ;;  %v967_v51 = vmax.f32 %v963_v27, %v2356_v4 }
  0xe4   : > { %v968_v49 = vmax.f32 %v964_v30, %v2358_v14 }
  0xe6   : > { %v2248_v56 = vpop.permute.xlu1 %724  ;;  %v2250_v57 = vpop.permute.xlu0 %719 }
  0xe7   : > { %vm848_vm13 = vcmp.lt.f32.partialorder %v2248_v56, %v2153_v45  ;;  %vm849_vm14 = vcmp.lt.f32.partialorder %v2248_v56, %v2155_v46  ;;  %vm846_vm15 = vcmp.lt.f32.partialorder %v2250_v57, %v2153_v45  ;;  %vm847_vm0 = vcmp.lt.f32.partialorder %v2250_v57, %v2155_v46 }
  0xe8   : > { %v2368_v38 = vsel %vm848_vm13, %v580_v41, -1e+30  ;;  %v579_v56 = vsub.f32 %v2246_v55, %v2160_v48  ;;  %v2382_v41 = vsel %vm849_vm14, %v581_v44, -1e+30  ;;  %v2384_v5 = vsel %vm846_vm15, %v578_v37, -1e+30 }
  0xe9   : > { %2906 = vst [vmem:[#allocation18_spill] sm:$0xff] %v2368_v38  ;;  %2907 = vst [vmem:[#allocation19_spill] sm:$0xff] %v2382_v41  ;;  %v973_v57 = vmax.f32 %v969_v16, %v2368_v38  ;;  %v974_v16 = vmax.f32 %v970_v39, %v2382_v41 }
  0xea   : > { %v2252_v58 = vpop.permute.xlu1 %466  ;;  %v2254_v59 = vpop.permute.xlu0 %461  ;;  %v2387_v17 = vsel %vm847_vm0, %v579_v56, -1e+30  ;;  %v971_v56 = vmax.f32 %v967_v51, %v2384_v5 }
  0xeb   : > { %v584_v55 = vsub.f32 %v2252_v58, %v2158_v47  ;;  %v585_v19 = vsub.f32 %v2252_v58, %v2160_v48  ;;  %v582_v27 = vsub.f32 %v2254_v59, %v2158_v47  ;;  %v583_v30 = vsub.f32 %v2254_v59, %v2160_v48 }
  0xee   : > { %v2256_v60 = vpop.permute.xlu1 %734  ;;  %v2258_v1 = vpop.permute.xlu0 %729 }
  0xef   : > { %vm852_vm1 = vcmp.lt.f32.partialorder %v2256_v60, %v2153_v45  ;;  %vm853_vm2 = vcmp.lt.f32.partialorder %v2256_v60, %v2155_v46  ;;  %vm850_vm3 = vcmp.lt.f32.partialorder %v2258_v1, %v2153_v45  ;;  %vm851_vm4 = vcmp.lt.f32.partialorder %v2258_v1, %v2155_v46 }
  0xf0   : > { %v2413_v44 = vsel %vm852_vm1, %v584_v55, -1e+30  ;;  %v2415_v37 = vsel %vm853_vm2, %v585_v19, -1e+30  ;;  %v2423_v38 = vsel %vm850_vm3, %v582_v27, -1e+30 }
  0xf1   : > { %2908 = vst [vmem:[#allocation20_spill] sm:$0xff] %v2413_v44  ;;  %2909 = vst [vmem:[#allocation21_spill] sm:$0xff] %v2415_v37  ;;  %v977_v39 = vmax.f32 %v973_v57, %v2413_v44  ;;  %v978_v51 = vmax.f32 %v974_v16, %v2415_v37 }
  0xf2   : > { %v2260_v2 = vpop.permute.xlu1 %476  ;;  %v2262_v3 = vpop.permute.xlu0 %471 }
  0xf3   : > { %v588_v59 = vsub.f32 %v2260_v2, %v2158_v47  ;;  %v589_v1 = vsub.f32 %v2260_v2, %v2160_v48  ;;  %v586_v55 = vsub.f32 %v2262_v3, %v2158_v47  ;;  %v972_v2 = vmax.f32 %v968_v49, %v2387_v17 }
  0xf6   : > { %v2272_v6 = vpop.permute.xlu1 %744  ;;  %v2274_v7 = vpop.permute.xlu0 %739 }
  0xf7   : > { %vm856_vm5 = vcmp.lt.f32.partialorder %v2272_v6, %v2153_v45  ;;  %vm857_vm6 = vcmp.lt.f32.partialorder %v2272_v6, %v2155_v46  ;;  %vm854_vm7 = vcmp.lt.f32.partialorder %v2274_v7, %v2153_v45  ;;  %v2427_v6 = vsel %vm851_vm4, %v583_v30, -1e+30 }
  0xf8   : > { %v2431_v19 = vsel %vm856_vm5, %v588_v59, -1e+30  ;;  %v2433_v50 = vsel %vm857_vm6, %v589_v1, -1e+30  ;;  %vm855_vm8 = vcmp.lt.f32.partialorder %v2274_v7, %v2155_v46  ;;  %v975_v30 = vmax.f32 %v971_v56, %v2423_v38 }
  0xf9   : > { %2910 = vst [vmem:[#allocation22_spill] sm:$0xff] %v2431_v19  ;;  %2911 = vst [vmem:[#allocation23_spill] sm:$0xff] %v2433_v50  ;;  %v587_v59 = vsub.f32 %v2262_v3, %v2160_v48  ;;  %v2445_v31 = vsel %vm854_vm7, %v586_v55, -1e+30  ;;  %v976_v1 = vmax.f32 %v972_v2, %v2427_v6  ;;  %v981_v49 = vmax.f32 %v977_v39, %v2431_v19 }
  0xfa   : > { %v2295_v25 = vpop.permute.xlu1 %486  ;;  %v2297_v26 = vpop.permute.xlu0 %481  ;;  %v982_v57 = vmax.f32 %v978_v51, %v2433_v50  ;;  %v979_v3 = vmax.f32 %v975_v30, %v2445_v31 }
  0xfb   : > { %v2452_v7 = vsel %vm855_vm8, %v587_v59, -1e+30  ;;  %v592_v16 = vsub.f32 %v2295_v25, %v2158_v47  ;;  %v593_v56 = vsub.f32 %v2295_v25, %v2160_v48  ;;  %v590_v55 = vsub.f32 %v2297_v26, %v2158_v47 }
  0xfc   : > { %2912 = vst [vmem:[#allocation24_spill] sm:$0xff] %v2452_v7 }
  0xfe   : > { %v2314_v52 = vpop.permute.xlu1 %754  ;;  %v2316_v15 = vpop.permute.xlu0 %749 }
  0xff   : > { %vm860_vm9 = vcmp.lt.f32.partialorder %v2314_v52, %v2153_v45  ;;  %vm861_vm10 = vcmp.lt.f32.partialorder %v2314_v52, %v2155_v46  ;;  %vm858_vm11 = vcmp.lt.f32.partialorder %v2316_v15, %v2153_v45  ;;  %vm859_vm12 = vcmp.lt.f32.partialorder %v2316_v15, %v2155_v46 }
 0x100   : > { %v591_v52 = vsub.f32 %v2297_v26, %v2160_v48  ;;  %v2471_v51 = vsel %vm860_vm9, %v592_v16, -1e+30  ;;  %v2477_v25 = vsel %vm861_vm10, %v593_v56, -1e+30  ;;  %v2479_v30 = vsel %vm858_vm11, %v590_v55, -1e+30 }
 0x101   : > { %2913 = vst [vmem:[#allocation25_spill] sm:$0xff] %v2471_v51  ;;  %2914 = vst [vmem:[#allocation26_spill] sm:$0xff] %v2477_v25  ;;  %v980_v26 = vmax.f32 %v976_v1, %v2452_v7  ;;  %v986_v19 = vmax.f32 %v982_v57, %v2477_v25  ;;  %v983_v37 = vmax.f32 %v979_v3, %v2479_v30 }
 0x102   : > { %v2345_v29 = vpop.permute.xlu1 %496  ;;  %v2347_v43 = vpop.permute.xlu0 %491  ;;  %v2486_v16 = vsel %vm859_vm12, %v591_v52, -1e+30  ;;  %v985_v52 = vmax.f32 %v981_v49, %v2471_v51 }
 0x103   : > { %v596_v15 = vsub.f32 %v2345_v29, %v2158_v47  ;;  %v597_v59 = vsub.f32 %v2345_v29, %v2160_v48  ;;  %v595_v56 = vsub.f32 %v2347_v43, %v2160_v48 }
 0x106   : > { %v2376_v42 = vpop.permute.xlu1 %764  ;;  %v2378_v28 = vpop.permute.xlu0 %759 }
 0x107   : > { %vm864_vm13 = vcmp.lt.f32.partialorder %v2376_v42, %v2153_v45  ;;  %vm865_vm14 = vcmp.lt.f32.partialorder %v2376_v42, %v2155_v46  ;;  %vm862_vm15 = vcmp.lt.f32.partialorder %v2378_v28, %v2153_v45  ;;  %vm863_vm0 = vcmp.lt.f32.partialorder %v2378_v28, %v2155_v46 }
 0x108   : > { %v594_v42 = vsub.f32 %v2347_v43, %v2158_v47  ;;  %v2496_v55 = vsel %vm864_vm13, %v596_v15, -1e+30  ;;  %v2498_v50 = vsel %vm865_vm14, %v597_v59, -1e+30  ;;  %v984_v28 = vmax.f32 %v980_v26, %v2486_v16 }
 0x109   : > { %2915 = vst [vmem:[#allocation27_spill] sm:$0xff] %v2496_v55  ;;  %2916 = vst [vmem:[#allocation28_spill] sm:$0xff] %v2498_v50  ;;  %v2507_v7 = vsel %vm863_vm0, %v595_v56, -1e+30  ;;  %v989_v15 = vmax.f32 %v985_v52, %v2496_v55  ;;  %v990_v59 = vmax.f32 %v986_v19, %v2498_v50 }
 0x10a   : > { %v2409_v60 = vpop.permute.xlu1 %506  ;;  %v2411_v58 = vpop.permute.xlu0 %501  ;;  %v2505_v44 = vsel %vm862_vm15, %v594_v42, -1e+30  ;;  %2917 = vst [vmem:[#allocation29_spill] sm:$0xff] %v2507_v7 }
 0x10b   : > { %v600_v43 = vsub.f32 %v2409_v60, %v2158_v47  ;;  %v601_v49 = vsub.f32 %v2409_v60, %v2160_v48  ;;  %v598_v57 = vsub.f32 %v2411_v58, %v2158_v47  ;;  %v987_v19 = vmax.f32 %v983_v37, %v2505_v44 }
 0x10c   : > { %v599_v56 = vsub.f32 %v2411_v58, %v2160_v48 }
 0x10e   : > { %v775_v27 = vpop.permute.xlu1 %774  ;;  %v2440_v41 = vpop.permute.xlu0 %769 }
 0x10f   : > { %vm868_vm1 = vcmp.lt.f32.partialorder %v775_v27, %v2153_v45  ;;  %vm869_vm2 = vcmp.lt.f32.partialorder %v775_v27, %v2155_v46  ;;  %vm866_vm3 = vcmp.lt.f32.partialorder %v2440_v41, %v2153_v45  ;;  %vm867_vm4 = vcmp.lt.f32.partialorder %v2440_v41, %v2155_v46 }
 0x110   : > { %v2520_v3 = vsel %vm868_vm1, %v600_v43, -1e+30  ;;  %v988_v27 = vmax.f32 %v984_v28, %v2507_v7  ;;  %v2529_v60 = vsel %vm869_vm2, %v601_v49, -1e+30  ;;  %v2531_v52 = vsel %vm866_vm3, %v598_v57, -1e+30 }
 0x111   : > { %2918 = vst [vmem:[#allocation30_spill] sm:$0xff] %v2520_v3  ;;  %2919 = vst [vmem:[#allocation31_spill] sm:$0xff] %v2529_v60  ;;  %v993_v41 = vmax.f32 %v989_v15, %v2520_v3  ;;  %v2536_v50 = vsel %vm867_vm4, %v599_v56, -1e+30  ;;  %vm1398_vm1 = vcmask 0   ;;  %vm1318_vm2 = vcmask 7168  }
 0x112   : > { %v517_v2 = vpop.permute.xlu1 %516  ;;  %v2467_v39 = vpop.permute.xlu0 %511 }
 0x113   : > { %v604_v43 = vsub.f32 %v517_v2, %v2158_v47  ;;  %v605_v37 = vsub.f32 %v517_v2, %v2160_v48  ;;  %v602_v58 = vsub.f32 %v2467_v39, %v2158_v47  ;;  %v603_v28 = vsub.f32 %v2467_v39, %v2160_v48 }
 0x116   : > { %v785_v29 = vpop.permute.xlu1 %784  ;;  %v780_v1 = vpop.permute.xlu0 %779 }
 0x117   : > { %vm872_vm5 = vcmp.lt.f32.partialorder %v785_v29, %v2153_v45  ;;  %vm873_vm6 = vcmp.lt.f32.partialorder %v785_v29, %v2155_v46  ;;  %vm870_vm7 = vcmp.lt.f32.partialorder %v780_v1, %v2153_v45  ;;  %vm871_vm8 = vcmp.lt.f32.partialorder %v780_v1, %v2155_v46 }
 0x118   : > { %v2544_v49 = vsel %vm872_vm5, %v604_v43, -1e+30  ;;  %v2547_v55 = vsel %vm873_vm6, %v605_v37, -1e+30  ;;  %v2552_v2 = vsel %vm870_vm7, %v602_v58, -1e+30  ;;  %v994_v1 = vmax.f32 %v990_v59, %v2529_v60 }
 0x119   : > { %2920 = vst [vmem:[#allocation32_spill] sm:$0xff] %v2547_v55  ;;  %v991_v43 = vmax.f32 %v987_v19, %v2531_v52  ;;  %v992_v37 = vmax.f32 %v988_v27, %v2536_v50  ;;  %v2560_v3 = vsel %vm871_vm8, %v603_v28, -1e+30  ;;  %v997_v7 = vmax.f32 %v993_v41, %v2544_v49 }
 0x11a   : > { %v527_v26 = vpop.permute.xlu1 %526  ;;  %v522_v42 = vpop.permute.xlu0 %521  ;;  %v998_v59 = vmax.f32 %v994_v1, %v2547_v55 }
 0x11b   : > { %v608_v15 = vsub.f32 %v527_v26, %v2158_v47  ;;  %v609_v39 = vsub.f32 %v527_v26, %v2160_v48  ;;  %v606_v56 = vsub.f32 %v522_v42, %v2158_v47  ;;  %v995_v19 = vmax.f32 %v991_v43, %v2552_v2 }
 0x11c   : > { %v607_v27 = vsub.f32 %v522_v42, %v2160_v48  ;;  %v996_v28 = vmax.f32 %v992_v37, %v2560_v3 }
 0x11e   : > { %v795_v57 = vpop.permute.xlu1 %794  ;;  %v790_v29 = vpop.permute.xlu0 %789 }
 0x11f   : > { %vm876_vm9 = vcmp.lt.f32.partialorder %v795_v57, %v2153_v45  ;;  %vm877_vm10 = vcmp.lt.f32.partialorder %v795_v57, %v2155_v46  ;;  %vm874_vm11 = vcmp.lt.f32.partialorder %v790_v29, %v2153_v45  ;;  %vm875_vm12 = vcmp.lt.f32.partialorder %v790_v29, %v2155_v46 }
 0x120   : > { %v2562_v25 = vsel %vm876_vm9, %v608_v15, -1e+30  ;;  %v2564_v57 = vsel %vm877_vm10, %v609_v39, -1e+30  ;;  %v2567_v58 = vsel %vm874_vm11, %v606_v56, -1e+30 }
 0x121   : > { %2921 = vst [vmem:[#allocation33_spill] sm:$0xff] %v2562_v25  ;;  %2922 = vst [vmem:[#allocation34_spill] sm:$0xff] %v2564_v57  ;;  %v1001_v15 = vmax.f32 %v997_v7, %v2562_v25  ;;  %v1002_v39 = vmax.f32 %v998_v59, %v2564_v57  ;;  %v2576_v60 = vsel %vm875_vm12, %v607_v27, -1e+30  ;;  %v999_v29 = vmax.f32 %v995_v19, %v2567_v58 }
 0x122   : > { %v537_v51 = vpop.permute.xlu1 %536  ;;  %v532_v26 = vpop.permute.xlu0 %531  ;;  %v1000_v7 = vmax.f32 %v996_v28, %v2576_v60 }
 0x123   : > { %v612_v56 = vsub.f32 %v537_v51, %v2158_v47  ;;  %v613_v41 = vsub.f32 %v537_v51, %v2160_v48  ;;  %v610_v1 = vsub.f32 %v532_v26, %v2158_v47  ;;  %v611_v43 = vsub.f32 %v532_v26, %v2160_v48 }
 0x126   : > { %v805_v55 = vpop.permute.xlu1 %804  ;;  %v800_v42 = vpop.permute.xlu0 %799 }
 0x127   : > { %vm880_vm13 = vcmp.lt.f32.partialorder %v805_v55, %v2153_v45  ;;  %vm881_vm14 = vcmp.lt.f32.partialorder %v805_v55, %v2155_v46  ;;  %vm878_vm15 = vcmp.lt.f32.partialorder %v800_v42, %v2153_v45  ;;  %vm879_vm0 = vcmp.lt.f32.partialorder %v800_v42, %v2155_v46 }
 0x128   : > { %v2588_v37 = vsel %vm880_vm13, %v612_v56, -1e+30  ;;  %v2590_v59 = vsel %vm881_vm14, %v613_v41, -1e+30  ;;  %v2592_v51 = vsel %vm878_vm15, %v610_v1, -1e+30 }
 0x129   : > { %v1005_v47 = vmax.f32 %v1001_v15, %v2588_v37  ;;  %v1006_v48 = vmax.f32 %v1002_v39, %v2590_v59  ;;  %v2596_v26 = vsel %vm879_vm0, %v611_v43, -1e+30  ;;  %v1003_v55 = vmax.f32 %v999_v29, %v2592_v51  ;;  %v2600_v15 = vld [vmem:[#allocation2] sm:$0x1] }
 0x12a   : > { %v1004_v45 = vmax.f32 %v1000_v7, %v2596_v26 }
 0x12b   : > { %v1008_v19 = vmax.f32 %v1005_v47, %v1006_v48 }
 0x12c   : > { %v1007_v46 = vmax.f32 %v1003_v55, %v1004_v45 }
 0x12e   : > { %v1009_v27 = vmax.f32 %v1007_v46, %v1008_v19 }
 0x130   : > { %1010 = vmax.xlane.f32.xlu0 %v1009_v27 }
 0x1bd   : > { %v1011_v28 = vpop.xlane.xlu0 %1010 }
 0x1be   : > { %v1012_v56 = vrot.slane %v1011_v28, 4 }
 0x1c0   : > { %v1013_v41 = vmax.f32 %v1011_v28, %v1012_v56 }
 0x1c2   : > { %v1014_v42 = vrot.slane %v1013_v41, 2 }
 0x1c4   : > { %v1015_v1 = vmax.f32 %v1013_v41, %v1014_v42 }
 0x1c6   : > { %v1016_v57 = vrot.slane %v1015_v1, 1 }
 0x1c8   : > { %v1017_v25 = vmax.f32 %v1015_v1, %v1016_v57 }
 0x1ca   : > { %1598 = vpush %v1017_v25 }
 0x1fb   : > { %s1599_s23 = spop %1598 }
 0x1fc   : > { %v1019_v39 = vstv %s1599_s23 }
 0x1fd   : > { %v2603_v29 = vmax.f32 %v2600_v15, %v1019_v39 }
 0x1ff   : > { %v1392_v43 = vsub.f32 %v2600_v15, %v2603_v29  ;;  %1400 = vst.msk [vmem:[#allocation2] sm:$0x1] %vm1398_vm1, %v2603_v29  ;;  %v1025_v7 = vrot.slane %v2603_v29, %v2145_v40 }
 0x201   : > { %1027 = vperm.xlu1 %1682, %v1025_v7  }
 0x280   : > { %v2611_v57 = vpop.permute.xlu1 %1027 }
 0x281   : > { %v1032_v25 = vsub.f32 %v2168_v53, %v2611_v57  ;;  %v1033_v47 = vsub.f32 %v2170_v54, %v2611_v57  ;;  %v1030_v48 = vsub.f32 %v2276_v8, %v2611_v57  ;;  %v1031_v55 = vsub.f32 %v2278_v13, %v2611_v57 }
 0x282   : > { %v1034_v45 = vsub.f32 %v2184_v63, %v2611_v57  ;;  %v1035_v19 = vsub.f32 %v2186_v0, %v2611_v57  ;;  %v1038_v53 = vsub.f32 %v2200_v11, %v2611_v57  ;;  %v1039_v54 = vsub.f32 %v2202_v12, %v2611_v57 }
 0x283   : > { %v1098_v46 = vmul.f32 1.442695, %v1032_v25  ;;  %v1100_v27 = vmul.f32 1.442695, %v1033_v47  ;;  %v1094_v28 = vmul.f32 1.442695, %v1030_v48  ;;  %v1036_v13 = vsub.f32 %v2180_v61, %v2611_v57 }
 0x284   : > { %v1096_v56 = vmul.f32 1.442695, %v1031_v55  ;;  %v1102_v8 = vmul.f32 1.442695, %v1034_v45  ;;  %v1104_v63 = vmul.f32 1.442695, %v1035_v19  ;;  %v1037_v0 = vsub.f32 %v2182_v62, %v2611_v57 }
 0x285   : > { %1683 = vpow2.f32 %v1098_v46  ;;  %v1110_v41 = vmul.f32 1.442695, %v1038_v53  ;;  %v1042_v42 = vsub.f32 %v2216_v23, %v2611_v57  ;;  %v1112_v11 = vmul.f32 1.442695, %v1039_v54 }
 0x286   : > { %1685 = vpow2.f32 %v1100_v27  ;;  %v1043_v12 = vsub.f32 %v2218_v24, %v2611_v57  ;;  %v1106_v1 = vmul.f32 1.442695, %v1036_v13  ;;  %v1040_v61 = vsub.f32 %v2196_v9, %v2611_v57 }
 0x287   : > { %1687 = vpow2.f32 %v1094_v28  ;;  %v1108_v39 = vmul.f32 1.442695, %v1037_v0  ;;  %v1041_v62 = vsub.f32 %v2198_v10, %v2611_v57  ;;  %v1118_v7 = vmul.f32 1.442695, %v1042_v42 }
 0x288   : > { %1689 = vpow2.f32 %v1096_v56  ;;  %v1046_v23 = vsub.f32 %v2232_v35, %v2611_v57  ;;  %v1120_v25 = vmul.f32 1.442695, %v1043_v12  ;;  %v1047_v24 = vsub.f32 %v2234_v36, %v2611_v57 }
 0x289   : > { %1691 = vpow2.f32 %v1102_v8  ;;  %v1114_v47 = vmul.f32 1.442695, %v1040_v61  ;;  %v1044_v9 = vsub.f32 %v2212_v21, %v2611_v57  ;;  %v1116_v48 = vmul.f32 1.442695, %v1041_v62  ;;  %v2923_v61 = vld [vmem:[#allocation15_spill] sm:$0xff] }
 0x28a   : > { %1693 = vpow2.f32 %v1104_v63  ;;  %v1045_v10 = vsub.f32 %v2214_v22, %v2611_v57  ;;  %v1126_v45 = vmul.f32 1.442695, %v1046_v23  ;;  %v1050_v35 = vsub.f32 %v2321_v18, %v2611_v57 }
 0x28b   : > { %1695 = vpow2.f32 %v1110_v41  ;;  %v1128_v46 = vmul.f32 1.442695, %v1047_v24  ;;  %v1051_v36 = vsub.f32 %v2324_v20, %v2611_v57  ;;  %v1122_v21 = vmul.f32 1.442695, %v1044_v9 }
 0x28c   : > { %1697 = vpow2.f32 %v1112_v11  ;;  %v1048_v53 = vsub.f32 %v2228_v33, %v2611_v57  ;;  %v1124_v56 = vmul.f32 1.442695, %v1045_v10  ;;  %v1049_v54 = vsub.f32 %v2230_v34, %v2611_v57 }
 0x28d   : > { %1699 = vpow2.f32 %v1106_v1  ;;  %v1134_v13 = vmul.f32 1.442695, %v1050_v35  ;;  %v1054_v20 = vsub.f32 %v2356_v4, %v2611_v57  ;;  %v1136_v0 = vmul.f32 1.442695, %v1051_v36  ;;  %v2925_v35 = vld [vmem:[#allocation17_spill] sm:$0xff] }
 0x28e   : > { %1701 = vpow2.f32 %v1108_v39  ;;  %v1055_v33 = vsub.f32 %v2358_v14, %v2611_v57  ;;  %v1130_v11 = vmul.f32 1.442695, %v1048_v53  ;;  %v1052_v34 = vsub.f32 %v2304_v32, %v2611_v57 }
 0x28f   : > { %v1684_v55 = vpop.eup %1683  ;;  %1703 = vpow2.f32 %v1118_v7  ;;  %v1132_v1 = vmul.f32 1.442695, %v1049_v54  ;;  %v1053_v4 = vsub.f32 %v2923_v61, %v2611_v57  ;;  %v1142_v7 = vmul.f32 1.442695, %v1054_v20  ;;  %v2926_v54 = vld [vmem:[#allocation18_spill] sm:$0xff]  ;;  %v2927_v20 = vld [vmem:[#allocation19_spill] sm:$0xff] }
 0x290   : > { %v1686_v19 = vpop.eup %1685  ;;  %1705 = vpow2.f32 %v1120_v25  ;;  %v1058_v14 = vsub.f32 %v2384_v5, %v2611_v57  ;;  %v1144_v25 = vmul.f32 1.442695, %v1055_v33  ;;  %v1059_v32 = vsub.f32 %v2387_v17, %v2611_v57 }
 0x291   : > { %v1688_v27 = vpop.eup %1687  ;;  %v1225_v28 = vadd.f32 %v1686_v19, %v1684_v55  ;;  %1707 = vpow2.f32 %v1114_v47  ;;  %v1138_v9 = vmul.f32 1.442695, %v1052_v34  ;;  %v1057_v5 = vsub.f32 %v2925_v35, %v2611_v57  ;;  %v2931_v35 = vld [vmem:[#allocation22_spill] sm:$0xff] }
 0x292   : > { %v1690_v22 = vpop.eup %1689  ;;  %1709 = vpow2.f32 %v1116_v48  ;;  %v2924_v48 = vld [vmem:[#allocation16_spill] sm:$0xff]  ;;  %v1150_v36 = vmul.f32 1.442695, %v1058_v14  ;;  %v1062_v17 = vsub.f32 %v2423_v38, %v2611_v57  ;;  %v1061_v38 = vsub.f32 %v2927_v20, %v2611_v57  ;;  %v2930_v14 = vld [vmem:[#allocation21_spill] sm:$0xff] }
 0x293   : > { %v1692_v18 = vpop.eup %1691  ;;  %1226 = vadd.xlane.f32.xlu0 %v1225_v28  ;;  %v1222_v8 = vadd.f32 %v1690_v22, %v1688_v27  ;;  %1711 = vpow2.f32 %v1126_v45  ;;  %v1056_v10 = vsub.f32 %v2924_v48, %v2611_v57  ;;  %v1140_v45 = vmul.f32 1.442695, %v1053_v4  ;;  %v2929_v4 = vld [vmem:[#allocation20_spill] sm:$0xff] }
 0x294   : > { %v1694_v63 = vpop.eup %1693  ;;  %1713 = vpow2.f32 %v1128_v46  ;;  %v1152_v28 = vmul.f32 1.442695, %v1059_v32  ;;  %v1158_v33 = vmul.f32 1.442695, %v1062_v17  ;;  %v1071_v48 = vsub.f32 %v2486_v16, %v2611_v57 }
 0x295   : > { %v1696_v41 = vpop.eup %1695  ;;  %1223 = vadd.xlane.f32.xlu1 %v1222_v8  ;;  %v1228_v42 = vadd.f32 %v1694_v63, %v1692_v18  ;;  %1715 = vpow2.f32 %v1122_v21  ;;  %v1063_v21 = vsub.f32 %v2427_v6, %v2611_v57  ;;  %v1060_v18 = vsub.f32 %v2926_v54, %v2611_v57 }
 0x296   : > { %v1698_v12 = vpop.eup %1697  ;;  %1717 = vpow2.f32 %v1124_v56  ;;  %v1146_v56 = vmul.f32 1.442695, %v1056_v10  ;;  %v1066_v6 = vsub.f32 %v2445_v31, %v2611_v57  ;;  %v1065_v31 = vsub.f32 %v2930_v14, %v2611_v57 }
 0x297   : > { %v1700_v39 = vpop.eup %1699  ;;  %1229 = vadd.xlane.f32.xlu0 %v1228_v42  ;;  %v1234_v62 = vadd.f32 %v1698_v12, %v1696_v41  ;;  %1719 = vpow2.f32 %v1134_v13  ;;  %v1148_v13 = vmul.f32 1.442695, %v1057_v5  ;;  %v1160_v42 = vmul.f32 1.442695, %v1063_v21 }
 0x298   : > { %v1702_v23 = vpop.eup %1701  ;;  %1721 = vpow2.f32 %v1136_v0  ;;  %v1154_v61 = vmul.f32 1.442695, %v1060_v18  ;;  %v1166_v32 = vmul.f32 1.442695, %v1066_v6  ;;  %v1068_v5 = vsub.f32 %v2931_v35, %v2611_v57 }
 0x299   : > { %v1704_v24 = vpop.eup %1703  ;;  %1235 = vadd.xlane.f32.xlu1 %v1234_v62  ;;  %v1231_v47 = vadd.f32 %v1702_v23, %v1700_v39  ;;  %1723 = vpow2.f32 %v1130_v11  ;;  %v2928_v11 = vld [vmem:[#allocation24_spill] sm:$0xff]  ;;  %v1064_v39 = vsub.f32 %v2929_v4, %v2611_v57  ;;  %v1074_v16 = vsub.f32 %v2505_v44, %v2611_v57 }
 0x29a   : > { %v1706_v55 = vpop.eup %1705  ;;  %1725 = vpow2.f32 %v1132_v1  ;;  %v1067_v34 = vsub.f32 %v2928_v11, %v2611_v57 }
 0x29b   : > { %v1708_v19 = vpop.eup %1707  ;;  %1232 = vadd.xlane.f32.xlu0 %v1231_v47  ;;  %v1240_v46 = vadd.f32 %v1706_v55, %v1704_v24  ;;  %1727 = vpow2.f32 %v1142_v7  ;;  %v1156_v7 = vmul.f32 1.442695, %v1061_v38  ;;  %v1070_v24 = vsub.f32 %v2479_v30, %v2611_v57 }
 0x29c   : > { %v1710_v27 = vpop.eup %1709  ;;  %1729 = vpow2.f32 %v1144_v25 }
 0x29d   : > { %v1712_v53 = vpop.eup %1711  ;;  %1241 = vadd.xlane.f32.xlu1 %v1240_v46  ;;  %v1237_v22 = vadd.f32 %v1710_v27, %v1708_v19  ;;  %1731 = vpow2.f32 %v1138_v9  ;;  %v1168_v9 = vmul.f32 1.442695, %v1067_v34  ;;  %v1164_v46 = vmul.f32 1.442695, %v1065_v31  ;;  %v2937_v31 = vld [vmem:[#allocation28_spill] sm:$0xff] }
 0x29e   : > { %v1714_v8 = vpop.eup %1713  ;;  %1733 = vpow2.f32 %v1140_v45  ;;  %v1162_v45 = vmul.f32 1.442695, %v1064_v39  ;;  %v2936_v39 = vld [vmem:[#allocation27_spill] sm:$0xff] }
 0x29f   : > { %v1716_v63 = vpop.eup %1715  ;;  %1238 = vadd.xlane.f32.xlu0 %v1237_v22  ;;  %v1246_v0 = vadd.f32 %v1714_v8, %v1712_v53  ;;  %1735 = vpow2.f32 %v1150_v36  ;;  %v2932_v36 = vld [vmem:[#allocation23_spill] sm:$0xff]  ;;  %v1176_v53 = vmul.f32 1.442695, %v1071_v48  ;;  %v2933_v22 = vld [vmem:[#allocation29_spill] sm:$0xff]  ;;  %v1170_v8 = vmul.f32 1.442695, %v1068_v5 }
 0x2a0   : > { %v1718_v41 = vpop.eup %1717  ;;  %1737 = vpow2.f32 %v1152_v28  ;;  %v1069_v30 = vsub.f32 %v2932_v36, %v2611_v57  ;;  %v1174_v28 = vmul.f32 1.442695, %v1070_v24 }
 0x2a1   : > { %v1720_v12 = vpop.eup %1719  ;;  %1247 = vadd.xlane.f32.xlu1 %v1246_v0  ;;  %v1243_v1 = vadd.f32 %v1718_v41, %v1716_v63  ;;  %1739 = vpow2.f32 %v1146_v56  ;;  %v1075_v56 = vsub.f32 %v2933_v22, %v2611_v57  ;;  %v2935_v0 = vld [vmem:[#allocation26_spill] sm:$0xff]  ;;  %v1182_v41 = vmul.f32 1.442695, %v1074_v16 }
 0x2a2   : > { %v1722_v62 = vpop.eup %1721  ;;  %1741 = vpow2.f32 %v1148_v13  ;;  %v2934_v13 = vld [vmem:[#allocation25_spill] sm:$0xff]  ;;  %v1172_v63 = vmul.f32 1.442695, %v1069_v30  ;;  %v1073_v44 = vsub.f32 %v2935_v0, %v2611_v57  ;;  %v1087_v16 = vsub.f32 %v2576_v60, %v2611_v57 }
 0x2a3   : > { %v1724_v23 = vpop.eup %1723  ;;  %1244 = vadd.xlane.f32.xlu0 %v1243_v1  ;;  %v1252_v25 = vadd.f32 %v1722_v62, %v1720_v12  ;;  %1743 = vpow2.f32 %v1158_v33  ;;  %v1072_v20 = vsub.f32 %v2934_v13, %v2611_v57  ;;  %v1184_v34 = vmul.f32 1.442695, %v1075_v56 }
 0x2a4   : > { %v1726_v47 = vpop.eup %1725  ;;  %1745 = vpow2.f32 %v1160_v42  ;;  %v1078_v42 = vsub.f32 %v2531_v52, %v2611_v57  ;;  %v1079_v12 = vsub.f32 %v2536_v50, %v2611_v57  ;;  %v1076_v62 = vsub.f32 %v2936_v39, %v2611_v57 }
 0x2a5   : > { %v1728_v10 = vpop.eup %1727  ;;  %1253 = vadd.xlane.f32.xlu1 %v1252_v25  ;;  %v1249_v55 = vadd.f32 %v1726_v47, %v1724_v23  ;;  %1747 = vpow2.f32 %v1154_v61  ;;  %v1178_v4 = vmul.f32 1.442695, %v1072_v20  ;;  %v1180_v14 = vmul.f32 1.442695, %v1073_v44 }
 0x2a6   : > { %v1730_v19 = vpop.eup %1729  ;;  %1749 = vpow2.f32 %v1156_v7  ;;  %v1077_v52 = vsub.f32 %v2937_v31, %v2611_v57  ;;  %v1082_v50 = vsub.f32 %v2552_v2, %v2611_v57  ;;  %v1192_v47 = vmul.f32 1.442695, %v1079_v12  ;;  %v2942_v12 = vld [vmem:[#allocation34_spill] sm:$0xff] }
 0x2a7   : > { %v1732_v17 = vpop.eup %1731  ;;  %1250 = vadd.xlane.f32.xlu0 %v1249_v55  ;;  %v1258_v27 = vadd.f32 %v1730_v19, %v1728_v10  ;;  %1751 = vpow2.f32 %v1166_v32  ;;  %v1190_v32 = vmul.f32 1.442695, %v1078_v42  ;;  %v1186_v55 = vmul.f32 1.442695, %v1076_v62 }
 0x2a8   : > { %v1734_v21 = vpop.eup %1733  ;;  %1753 = vpow2.f32 %v1168_v9  ;;  %v1083_v9 = vsub.f32 %v2560_v3, %v2611_v57  ;;  %v1188_v19 = vmul.f32 1.442695, %v1077_v52  ;;  %v1086_v3 = vsub.f32 %v2567_v58, %v2611_v57 }
 0x2a9   : > { %v1736_v54 = vpop.eup %1735  ;;  %1259 = vadd.xlane.f32.xlu1 %v1258_v27  ;;  %v1255_v18 = vadd.f32 %v1734_v21, %v1732_v17  ;;  %1755 = vpow2.f32 %v1162_v45  ;;  %v2938_v45 = vld [vmem:[#allocation30_spill] sm:$0xff]  ;;  %v1198_v17 = vmul.f32 1.442695, %v1082_v50  ;;  %v1084_v56 = vsub.f32 %v2544_v49, %v2611_v57 }
 0x2aa   : > { %v1738_v38 = vpop.eup %1737  ;;  %1757 = vpow2.f32 %v1164_v46  ;;  %v1080_v35 = vsub.f32 %v2938_v45, %v2611_v57  ;;  %v2939_v46 = vld [vmem:[#allocation31_spill] sm:$0xff]  ;;  %v1090_v60 = vsub.f32 %v2592_v51, %v2611_v57  ;;  %v1208_v0 = vmul.f32 1.442695, %v1087_v16 }
 0x2ab   : > { %v1740_v33 = vpop.eup %1739  ;;  %1256 = vadd.xlane.f32.xlu0 %v1255_v18  ;;  %v1264_v6 = vadd.f32 %v1738_v38, %v1736_v54  ;;  %1759 = vpow2.f32 %v1174_v28  ;;  %v1081_v2 = vsub.f32 %v2939_v46, %v2611_v57  ;;  %v1200_v28 = vmul.f32 1.442695, %v1083_v9 }
 0x2ac   : > { %v1742_v11 = vpop.eup %1741  ;;  %1761 = vpow2.f32 %v1176_v53  ;;  %v1194_v22 = vmul.f32 1.442695, %v1080_v35  ;;  %v1206_v38 = vmul.f32 1.442695, %v1086_v3  ;;  %v1091_v49 = vsub.f32 %v2596_v26, %v2611_v57 }
 0x2ad   : > { %v1744_v1 = vpop.eup %1743  ;;  %1265 = vadd.xlane.f32.xlu1 %v1264_v6  ;;  %v1261_v61 = vadd.f32 %v1742_v11, %v1740_v33  ;;  %1763 = vpow2.f32 %v1170_v8  ;;  %v1196_v18 = vmul.f32 1.442695, %v1081_v2  ;;  %v2940_v8 = vld [vmem:[#allocation32_spill] sm:$0xff]  ;;  %v1202_v6 = vmul.f32 1.442695, %v1084_v56 }
 0x2ae   : > { %v1746_v7 = vpop.eup %1745  ;;  %1765 = vpow2.f32 %v1172_v63  ;;  %v1085_v58 = vsub.f32 %v2940_v8, %v2611_v57  ;;  %v1089_v51 = vsub.f32 %v2942_v12, %v2611_v57  ;;  %v1092_v26 = vsub.f32 %v2588_v37, %v2611_v57 }
 0x2af   : > { %v1748_v23 = vpop.eup %1747  ;;  %1262 = vadd.xlane.f32.xlu0 %v1261_v61  ;;  %v1270_v25 = vadd.f32 %v1746_v7, %v1744_v1  ;;  %1767 = vpow2.f32 %v1182_v41  ;;  %v2941_v41 = vld [vmem:[#allocation33_spill] sm:$0xff]  ;;  %v1216_v62 = vmul.f32 1.442695, %v1091_v49  ;;  %v1093_v7 = vsub.f32 %v2590_v59, %v2611_v57 }
 0x2b0   : > { %v1750_v24 = vpop.eup %1749  ;;  %1769 = vpow2.f32 %v1184_v34  ;;  %v1088_v42 = vsub.f32 %v2941_v41, %v2611_v57  ;;  %v1204_v34 = vmul.f32 1.442695, %v1085_v58 }
 0x2b1   : > { %v1752_v48 = vpop.eup %1751  ;;  %1271 = vadd.xlane.f32.xlu1 %v1270_v25  ;;  %v1267_v10 = vadd.f32 %v1750_v24, %v1748_v23  ;;  %1771 = vpow2.f32 %v1178_v4  ;;  %v1214_v4 = vmul.f32 1.442695, %v1090_v60  ;;  %v1212_v25 = vmul.f32 1.442695, %v1089_v51 }
 0x2b2   : > { %v1754_v5 = vpop.eup %1753  ;;  %1773 = vpow2.f32 %v1180_v14  ;;  %v1210_v52 = vmul.f32 1.442695, %v1088_v42  ;;  %v1218_v24 = vmul.f32 1.442695, %v1092_v26 }
 0x2b3   : > { %v1756_v36 = vpop.eup %1755  ;;  %1268 = vadd.xlane.f32.xlu0 %v1267_v10  ;;  %v1276_v30 = vadd.f32 %v1754_v5, %v1752_v48  ;;  %1775 = vpow2.f32 %v1190_v32 }
 0x2b4   : > { %v1758_v27 = vpop.eup %1757  ;;  %1777 = vpow2.f32 %v1192_v47  ;;  %v1220_v47 = vmul.f32 1.442695, %v1093_v7 }
 0x2b5   : > { %v1760_v21 = vpop.eup %1759  ;;  %1277 = vadd.xlane.f32.xlu1 %v1276_v30  ;;  %v1273_v53 = vadd.f32 %v1758_v27, %v1756_v36  ;;  %1779 = vpow2.f32 %v1186_v55 }
 0x2b6   : > { %v1762_v54 = vpop.eup %1761  ;;  %1781 = vpow2.f32 %v1188_v19 }
 0x2b7   : > { %v1764_v13 = vpop.eup %1763  ;;  %1274 = vadd.xlane.f32.xlu0 %v1273_v53  ;;  %v1282_v20 = vadd.f32 %v1762_v54, %v1760_v21  ;;  %1783 = vpow2.f32 %v1198_v17 }
 0x2b8   : > { %v1766_v63 = vpop.eup %1765  ;;  %1785 = vpow2.f32 %v1200_v28 }
 0x2b9   : > { %v1768_v44 = vpop.eup %1767  ;;  %1283 = vadd.xlane.f32.xlu1 %v1282_v20  ;;  %v1279_v33 = vadd.f32 %v1766_v63, %v1764_v13  ;;  %1787 = vpow2.f32 %v1194_v22 }
 0x2ba   : > { %v1770_v11 = vpop.eup %1769  ;;  %1789 = vpow2.f32 %v1196_v18 }
 0x2bb   : > { %v1772_v1 = vpop.eup %1771  ;;  %1280 = vadd.xlane.f32.xlu0 %v1279_v33  ;;  %v1288_v61 = vadd.f32 %v1770_v11, %v1768_v44  ;;  %1791 = vpow2.f32 %v1206_v38 }
 0x2bc   : > { %v1774_v39 = vpop.eup %1773  ;;  %1793 = vpow2.f32 %v1208_v0 }
 0x2bd   : > { %v1776_v14 = vpop.eup %1775  ;;  %1289 = vadd.xlane.f32.xlu1 %v1288_v61  ;;  %v1285_v31 = vadd.f32 %v1774_v39, %v1772_v1  ;;  %1795 = vpow2.f32 %v1202_v6 }
 0x2be   : > { %v1778_v23 = vpop.eup %1777  ;;  %1797 = vpow2.f32 %v1204_v34 }
 0x2bf   : > { %v1780_v32 = vpop.eup %1779  ;;  %1286 = vadd.xlane.f32.xlu0 %v1285_v31  ;;  %v1294_v50 = vadd.f32 %v1778_v23, %v1776_v14  ;;  %1799 = vpow2.f32 %v1214_v4 }
 0x2c0   : > { %v1782_v37 = vpop.eup %1781  ;;  %1801 = vpow2.f32 %v1216_v62 }
 0x2c1   : > { %v1784_v9 = vpop.eup %1783  ;;  %1295 = vadd.xlane.f32.xlu1 %v1294_v50  ;;  %v1291_v48 = vadd.f32 %v1782_v37, %v1780_v32  ;;  %1803 = vpow2.f32 %v1210_v52 }
 0x2c2   : > { %v1786_v59 = vpop.eup %1785  ;;  %1805 = vpow2.f32 %v1212_v25 }
 0x2c3   : > { %v1788_v57 = vpop.eup %1787  ;;  %1292 = vadd.xlane.f32.xlu0 %v1291_v48  ;;  %v1300_v10 = vadd.f32 %v1786_v59, %v1784_v9  ;;  %1807 = vpow2.f32 %v1218_v24 }
 0x2c4   : > { %v1790_v55 = vpop.eup %1789  ;;  %1809 = vpow2.f32 %v1220_v47 }
 0x2c5   : > { %v1792_v45 = vpop.eup %1791  ;;  %1301 = vadd.xlane.f32.xlu1 %v1300_v10  ;;  %v1297_v35 = vadd.f32 %v1790_v55, %v1788_v57 }
 0x2c6   : > { %v1794_v5 = vpop.eup %1793 }
 0x2c7   : > { %v1796_v19 = vpop.eup %1795  ;;  %1298 = vadd.xlane.f32.xlu0 %v1297_v35  ;;  %v1306_v46 = vadd.f32 %v1794_v5, %v1792_v45 }
 0x2c8   : > { %v1798_v2 = vpop.eup %1797 }
 0x2c9   : > { %v1800_v36 = vpop.eup %1799  ;;  %1307 = vadd.xlane.f32.xlu1 %v1306_v46  ;;  %v1303_v30 = vadd.f32 %v1798_v2, %v1796_v19 }
 0x2ca   : > { %v1802_v17 = vpop.eup %1801 }
 0x2cb   : > { %v1804_v3 = vpop.eup %1803  ;;  %1304 = vadd.xlane.f32.xlu0 %v1303_v30  ;;  %v1312_v27 = vadd.f32 %v1802_v17, %v1800_v36 }
 0x2cc   : > { %v1806_v28 = vpop.eup %1805 }
 0x2cd   : > { %v1808_v16 = vpop.eup %1807  ;;  %1313 = vadd.xlane.f32.xlu1 %v1312_v27  ;;  %v1309_v21 = vadd.f32 %v1806_v28, %v1804_v3 }
 0x2ce   : > { %v1810_v53 = vpop.eup %1809 }
 0x2cf   : > { %1310 = vadd.xlane.f32.xlu0 %v1309_v21  ;;  %v1315_v22 = vadd.f32 %v1810_v53, %v1808_v16 }
 0x2d3   : > { %1316 = vadd.xlane.f32.xlu0 %v1315_v22 }
 0x320   : > { %v1227_v56 = vpop.xlane.xlu0 %1226 }
 0x321   : > { %v1320_v18 = vsel %vm1318_vm2, %v1227_v56, 0.0 }
 0x322   : > { %v1224_v54 = vpop.xlane.xlu1 %1223 }
 0x323   : > { %v1319_v8 = vsel %vm1318_vm2, %v1224_v54, 0.0 }
 0x324   : > { %v1230_v58 = vpop.xlane.xlu0 %1229  ;;  %v1321_v20 = vadd.f32 %v1320_v18, %v1319_v8 }
 0x325   : > { %v1322_v13 = vsel %vm1318_vm2, %v1230_v58, 0.0 }
 0x326   : > { %v1236_v38 = vpop.xlane.xlu1 %1235  ;;  %v1323_v60 = vadd.f32 %v1322_v13, %v1321_v20 }
 0x327   : > { %v1326_v33 = vsel %vm1318_vm2, %v1236_v38, 0.0 }
 0x328   : > { %v1233_v63 = vpop.xlane.xlu0 %1232 }
 0x329   : > { %v1324_v0 = vsel %vm1318_vm2, %v1233_v63, 0.0 }
 0x32a   : > { %v1325_v49 = vadd.f32 %v1324_v0, %v1323_v60  ;;  %v1242_v44 = vpop.xlane.xlu1 %1241 }
 0x32b   : > { %v1330_v12 = vsel %vm1318_vm2, %v1242_v44, 0.0 }
 0x32c   : > { %v1239_v6 = vpop.xlane.xlu0 %1238  ;;  %v1327_v41 = vadd.f32 %v1326_v33, %v1325_v49 }
 0x32d   : > { %v1328_v42 = vsel %vm1318_vm2, %v1239_v6, 0.0 }
 0x32e   : > { %v1329_v11 = vadd.f32 %v1328_v42, %v1327_v41  ;;  %v1248_v34 = vpop.xlane.xlu1 %1247 }
 0x32f   : > { %v1334_v39 = vsel %vm1318_vm2, %v1248_v34, 0.0 }
 0x330   : > { %v1245_v51 = vpop.xlane.xlu0 %1244  ;;  %v1331_v1 = vadd.f32 %v1330_v12, %v1329_v11 }
 0x331   : > { %v1332_v61 = vsel %vm1318_vm2, %v1245_v51, 0.0 }
 0x332   : > { %v1333_v4 = vadd.f32 %v1332_v61, %v1331_v1  ;;  %v1254_v26 = vpop.xlane.xlu1 %1253 }
 0x333   : > { %v1338_v23 = vsel %vm1318_vm2, %v1254_v26, 0.0 }
 0x334   : > { %v1251_v62 = vpop.xlane.xlu0 %1250  ;;  %v1335_v7 = vadd.f32 %v1334_v39, %v1333_v4 }
 0x335   : > { %v1336_v14 = vsel %vm1318_vm2, %v1251_v62, 0.0 }
 0x336   : > { %v1337_v31 = vadd.f32 %v1336_v14, %v1335_v7  ;;  %v1260_v52 = vpop.xlane.xlu1 %1259 }
 0x337   : > { %v1342_v47 = vsel %vm1318_vm2, %v1260_v52, 0.0 }
 0x338   : > { %v1257_v25 = vpop.xlane.xlu0 %1256  ;;  %v1339_v32 = vadd.f32 %v1338_v23, %v1337_v31 }
 0x339   : > { %v1340_v50 = vsel %vm1318_vm2, %v1257_v25, 0.0 }
 0x33a   : > { %v1341_v24 = vadd.f32 %v1340_v50, %v1339_v32  ;;  %v1266_v37 = vpop.xlane.xlu1 %1265 }
 0x33b   : > { %v1346_v55 = vsel %vm1318_vm2, %v1266_v37, 0.0 }
 0x33c   : > { %v1263_v9 = vpop.xlane.xlu0 %1262  ;;  %v1343_v48 = vadd.f32 %v1342_v47, %v1341_v24 }
 0x33d   : > { %v1344_v59 = vsel %vm1318_vm2, %v1263_v9, 0.0 }
 0x33e   : > { %v1345_v57 = vadd.f32 %v1344_v59, %v1343_v48  ;;  %v1272_v10 = vpop.xlane.xlu1 %1271 }
 0x33f   : > { %v1350_v2 = vsel %vm1318_vm2, %v1272_v10, 0.0  ;;  %v1393_v10 = vmul.f32 1.442695, %v1392_v43 }
 0x340   : > { %v1269_v45 = vpop.xlane.xlu0 %1268  ;;  %v1347_v35 = vadd.f32 %v1346_v55, %v1345_v57 }
 0x341   : > { %v1348_v5 = vsel %vm1318_vm2, %v1269_v45, 0.0  ;;  %1811 = vpow2.f32 %v1393_v10  ;;  %v1391_v45 = vld [vmem:[#allocation3] sm:$0x1] }
 0x342   : > { %v1349_v19 = vadd.f32 %v1348_v5, %v1347_v35  ;;  %v1278_v46 = vpop.xlane.xlu1 %1277 }
 0x343   : > { %v1354_v28 = vsel %vm1318_vm2, %v1278_v46, 0.0  ;;  %v1405_v46 = vld [vmem:[#allocation2] sm:$0x1] (!%p1593_p1) }
 0x344   : > { %v1275_v36 = vpop.xlane.xlu0 %1274  ;;  %v1351_v30 = vadd.f32 %v1350_v2, %v1349_v19  ;;  %v1944_v2 = vmov (!%p1593_p1), 0  }
 0x345   : > { %v1352_v17 = vsel %vm1318_vm2, %v1275_v36, 0.0  ;;  %1813 = vset.pattern.permute.xlu0 (!%p1593_p1), %v1944_v2 }
 0x346   : > { %v1353_v3 = vadd.f32 %v1352_v17, %v1351_v30  ;;  %v1284_v27 = vpop.xlane.xlu1 %1283  ;;  %1408 = vperm.xlu0 (!%p1593_p1), %1813, %v1405_v46  }
 0x347   : > { %v1358_v54 = vsel %vm1318_vm2, %v1284_v27, 0.0 }
 0x348   : > { %v1281_v16 = vpop.xlane.xlu0 %1280  ;;  %v1355_v21 = vadd.f32 %v1354_v28, %v1353_v3 }
 0x349   : > { %v1356_v53 = vsel %vm1318_vm2, %v1281_v16, 0.0 }
 0x34a   : > { %v1357_v22 = vadd.f32 %v1356_v53, %v1355_v21  ;;  %v1290_v56 = vpop.xlane.xlu1 %1289 }
 0x34b   : > { %v1362_v38 = vsel %vm1318_vm2, %v1290_v56, 0.0  ;;  %v1812_v55 = vpop.eup %1811 }
 0x34c   : > { %v1287_v18 = vpop.xlane.xlu0 %1286  ;;  %v1359_v8 = vadd.f32 %v1358_v54, %v1357_v22  ;;  %v1395_v35 = vmul.f32 %v1812_v55, %v1391_v45 }
 0x34d   : > { %v1360_v58 = vsel %vm1318_vm2, %v1287_v18, 0.0 }
 0x34e   : > { %v1361_v13 = vadd.f32 %v1360_v58, %v1359_v8  ;;  %v1296_v20 = vpop.xlane.xlu1 %1295 }
 0x34f   : > { %v1366_v33 = vsel %vm1318_vm2, %v1296_v20, 0.0 }
 0x350   : > { %v1293_v60 = vpop.xlane.xlu0 %1292  ;;  %v1363_v63 = vadd.f32 %v1362_v38, %v1361_v13 }
 0x351   : > { %v1364_v0 = vsel %vm1318_vm2, %v1293_v60, 0.0 }
 0x352   : > { %v1365_v49 = vadd.f32 %v1364_v0, %v1363_v63  ;;  %v1302_v44 = vpop.xlane.xlu1 %1301 }
 0x353   : > { %v1370_v12 = vsel %vm1318_vm2, %v1302_v44, 0.0 }
 0x354   : > { %v1299_v6 = vpop.xlane.xlu0 %1298  ;;  %v1367_v41 = vadd.f32 %v1366_v33, %v1365_v49 }
 0x355   : > { %v1368_v42 = vsel %vm1318_vm2, %v1299_v6, 0.0 }
 0x356   : > { %v1369_v11 = vadd.f32 %v1368_v42, %v1367_v41  ;;  %v1308_v34 = vpop.xlane.xlu1 %1307 }
 0x357   : > { %v1374_v26 = vsel %vm1318_vm2, %v1308_v34, 0.0 }
 0x358   : > { %v1305_v51 = vpop.xlane.xlu0 %1304  ;;  %v1371_v1 = vadd.f32 %v1370_v12, %v1369_v11 }
 0x359   : > { %v1372_v61 = vsel %vm1318_vm2, %v1305_v51, 0.0 }
 0x35a   : > { %v1373_v4 = vadd.f32 %v1372_v61, %v1371_v1  ;;  %v1314_v39 = vpop.xlane.xlu1 %1313 }
 0x35b   : > { %v1378_v52 = vsel %vm1318_vm2, %v1314_v39, 0.0 }
 0x35c   : > { %v1311_v62 = vpop.xlane.xlu0 %1310  ;;  %v1375_v7 = vadd.f32 %v1374_v26, %v1373_v4 }
 0x35d   : > { %v1376_v14 = vsel %vm1318_vm2, %v1311_v62, 0.0 }
 0x35e   : > { %v1377_v31 = vadd.f32 %v1376_v14, %v1375_v7 }
 0x360   : > { %v1317_v23 = vpop.xlane.xlu0 %1316  ;;  %v1379_v25 = vadd.f32 %v1378_v52, %v1377_v31 }
 0x361   : > { %v1380_v32 = vsel %vm1318_vm2, %v1317_v23, 0.0 }
 0x362   : > { %v1381_v50 = vadd.f32 %v1380_v32, %v1379_v25 }
 0x364   : > { %1382 = vadd.xlane.f32.xlu1 %v1381_v50 }
 0x3c5   : > { %v1409_v29 = vpop.permute.xlu0 (!%p1593_p1), %1408 }
 0x3c6   : > { %v1414_v43 = vrot.slane (!%p1593_p1), %v1409_v29, %v2145_v40 }
 0x3c8   : > { %1415 = vst [vmem:[%s277_s9] sm:$0x1] (!%p1593_p1), %v1414_v43 }
 0x3f1   : > { %v1383_v24 = vpop.xlane.xlu1 %1382 }
 0x3f2   : > { %v1384_v37 = vrot.slane %v1383_v24, 4 }
 0x3f4   : > { %v1385_v47 = vadd.f32 %v1384_v37, %v1383_v24 }
 0x3f6   : > { %v1386_v9 = vrot.slane %v1385_v47, 2 }
 0x3f8   : > { %v1387_v48 = vadd.f32 %v1386_v9, %v1385_v47 }
 0x3fa   : > { %v1388_v59 = vrot.slane %v1387_v48, 1 }
 0x3fc   : > { %v1389_v57 = vadd.f32 %v1388_v59, %v1387_v48 }
 0x3fe   : > { %1600 = vpush %v1389_v57 }
 0x42d   : > { %1404 = sbr.rel (%p1593_p1) target bundleno = 1214 (0x4be), region = 44 }
 0x42f   : > { %s1601_s29 = spop %1600 }
 0x430   : > { %v1396_v5 = vstv %s1601_s29 }
 0x431   : > { %v1397_v19 = vadd.f32 %v1396_v5, %v1395_v35 }
 0x433   : > { %1399 = vst.msk [vmem:[#allocation3] sm:$0x1] %vm1398_vm1, %v1397_v19 }
 0x43a   : > { %v1416_v15 = vld [vmem:[#allocation3] sm:$0x1] }
 0x43b   : > { %1419 = vperm.xlu0 %1813, %v1416_v15  }
 0x4ba   : > { %v1420_v36 = vpop.permute.xlu0 %1419 }
 0x4bb   : > { %v1425_v30 = vrot.slane %v1420_v36, %v2145_v40 }
 0x4bd   : > { %1426 = vst [vmem:[%s283_s11] sm:$0x1] %v1425_v30 }
 0x4be PF: > { %s1594_s21 = sshll.u32 %s1928_s22, 4  ;;  %s1444_s17 = sshll.u32 %s277_s9, 4  ;;  %s1445_s17 = int_to_ptr.vmem [resolvable:$true] %s1444_s17 }
 0x4bf   : > { %s2790_s16 = scalar_lea.hbm %s2871_s4, %s1594_s21  ;;  %s1428_s26 = scalar_lea.sflag [#allocation5], %s2047_s10 }
 0x4c0   : > { %s1814_s27 = scalar_lea.vmem %s1445_s17, 16  ;;  %s1945_s7 = smov [#allocation4]  }
 0x4c1   : > { %p1815_p2 = scmp.ne.s32.totalorder %s1445_s17, %s1814_s27  ;;  %s1818_s8 = sshll.u32 %s1945_s7, 4  ;;  %s1819_s8 = int_to_ptr.vmem [resolvable:$false] %s1818_s8 }
 0x4c2   : > { %s1820_s24 = scalar_lea.vmem %s1819_s8, 32  ;;  %p1821_p6 = scmp.lt.s32.totalorder %s1445_s17, %s1819_s8 }
 0x4c3   : > { %p1816_p4 = pnand %p1815_p2, %p2026_p3  ;;  %p1822_p7 = scmp.lt.s32.totalorder %s1820_s24, %s1814_s27 }
 0x4c5   : > { %p1817_p5 = pneg %p1816_p4  ;;  %p1823_p8 = por %p1822_p7, %p1821_p6 }
 0x4c7   : > { %p1824_p10 = pnand %p1823_p8, %p1817_p5 }
 0x4c9   : > { %1827 = shalt.err (!%p1824_p10)
}
 0x4ca   : > { %s1828_s9 = scalar_lea.hbm %s2790_s16, 16  ;;  %s1832_s14 = scalar_lea.hbm %s2871_s4, 32 }
 0x4cb   : > { %p1829_p11 = scmp.ne.s32.totalorder %s2790_s16, %s1828_s9  ;;  %p1833_p0 = scmp.lt.u32.totalorder %s2790_s16, %s2871_s4 }
 0x4cc   : > { %p1834_p1 = scmp.lt.u32.totalorder %s1832_s14, %s1828_s9  ;;  %p1836_p4 = scmp.lt.u32.totalorder %s1828_s9, %s2790_s16 }
 0x4cd   : > { %p1830_p12 = pnand %p1829_p11, %p2026_p3 }
 0x4ce   : > { %p1835_p2 = por %p1834_p1, %p1833_p0 }
 0x4cf   : > { %p1831_p13 = pneg %p1830_p12 }
 0x4d0   : > { %p1837_p5 = por %p1836_p4, %p1835_p2 }
 0x4d2   : > { %p1838_p6 = pnand %p1837_p5, %p1831_p13 }
 0x4d4   : > { %1841 = shalt.err (!%p1838_p6)
}
 0x4d5   : > { %1602 = dma.vmem_to_hbm [thread:$0]  (%p2026_p3), %s1445_s17, 16, %s2790_s16, %s1428_s26  }
 0x4d6   : > { %s2817_s27 = scalar_lea.hbm %s2872_s5, %s1594_s21  ;;  %s1457_s7 = sshll.u32 %s283_s11, 4  ;;  %s1458_s7 = int_to_ptr.vmem [resolvable:$true] %s1457_s7 }
 0x4d7   : > { %s1432_s8 = scalar_lea.sflag [#allocation7], %s2047_s10  ;;  %s1842_s24 = scalar_lea.vmem %s1458_s7, 16 }
 0x4d8   : > { %p1843_p7 = scmp.ne.s32.totalorder %s1458_s7, %s1842_s24  ;;  %s1946_s9 = smov [#allocation6]  }
 0x4d9   : > { %s1846_s28 = sshll.u32 %s1946_s9, 4  ;;  %s1847_s28 = int_to_ptr.vmem [resolvable:$false] %s1846_s28 }
 0x4da   : > { %p1844_p8 = pnand %p1843_p7, %p2026_p3  ;;  %s1848_s13 = scalar_lea.vmem %s1847_s28, 32 }
 0x4db   : > { %p1849_p11 = scmp.lt.s32.totalorder %s1458_s7, %s1847_s28  ;;  %p1850_p12 = scmp.lt.s32.totalorder %s1848_s13, %s1842_s24 }
 0x4dc   : > { %p1845_p10 = pneg %p1844_p8 }
 0x4dd   : > { %p1851_p13 = por %p1850_p12, %p1849_p11 }
 0x4df   : > { %p1852_p0 = pnand %p1851_p13, %p1845_p10 }
 0x4e1   : > { %1855 = shalt.err (!%p1852_p0)
}
 0x4e2   : > { %s1856_s22 = scalar_lea.hbm %s2817_s27, 16  ;;  %s1860_s21 = scalar_lea.hbm %s2872_s5, 32 }
 0x4e3   : > { %p1857_p1 = scmp.ne.s32.totalorder %s2817_s27, %s1856_s22  ;;  %p1861_p5 = scmp.lt.u32.totalorder %s2817_s27, %s2872_s5 }
 0x4e4   : > { %p1862_p6 = scmp.lt.u32.totalorder %s1860_s21, %s1856_s22  ;;  %p1864_p8 = scmp.lt.u32.totalorder %s1856_s22, %s2817_s27 }
 0x4e5   : > { %p1858_p2 = pnand %p1857_p1, %p2026_p3 }
 0x4e6   : > { %p1863_p7 = por %p1862_p6, %p1861_p5 }
 0x4e7   : > { %p1859_p4 = pneg %p1858_p2 }
 0x4e8   : > { %p1865_p10 = por %p1864_p8, %p1863_p7 }
 0x4ea   : > { %p1866_p11 = pnand %p1865_p10, %p1859_p4 }
 0x4ec   : > { %1869 = shalt.err (!%p1866_p11)
}
 0x4ed   : > { %1603 = dma.vmem_to_hbm [thread:$0]  (%p2026_p3), %s1458_s7, 16, %s2817_s27, %s1432_s8  }
 0x4ee PF: > { %p1613_p12 = scmp.ge.s32.totalorder %s1940_s25, 2  ;;  %s1469_s26 = sand.u32 1, %s1912_s18  }
 0x4ef   : > { %s1470_s14 = scalar_lea.sflag [#allocation5], %s1469_s26 }
 0x4f0   : > { %p1607_p13 = pnand %p1613_p12, %p2036_p9 }
 0x4f2   : > { %1903 = dma.done.wait (!%p1607_p13), %s1470_s14, 16  }
 0x4f3   : > { %1905 = vsyncadd (!%p1607_p13), %s1470_s14, 4294967280  ;;  %s1478_s23 = scalar_lea.sflag [#allocation7], %s1469_s26 }
 0x4f4   : > { %1907 = dma.done.wait (!%p1607_p13), %s1478_s23, 16  }
 0x4f5   : > { %1909 = vsyncadd (!%p1607_p13), %s1478_s23, 4294967280  ;;  %s22_s25 = sadd.s32 1, %s1940_s25   ;;  %s2943_s30 = sld [smem:[#allocation14_spill]] }
 0x4f6   : > { %p19_p0 = scmp.ge.s32.totalorder %s22_s25, 6   ;;  %s2944_s21 = sld [smem:[#allocation10_spill]] }
 0x4f7   : > { %s2945_s22 = sld [smem:[#allocation11_spill]]  ;;  %s2946_s23 = sld [smem:[#allocation12_spill]] }
 0x4f8   : > { %s2947_s24 = sld [smem:[#allocation13_spill]]  ;;  %s2948_s18 = smov %s1916_s19 }
 0x4f9   : > { %s2949_s19 = smov %s1920_s20  ;;  %21 = sbr.rel (!%p19_p0) target bundleno = 7 (0x7), region = 105 }
 0x4fb   : > { %s2950_s20 = smov %s2943_s30 }
 0x500   :  { %1482 = vsyncpa [#allocation5], 1 }
 0x501   :  { %1484 = vsyncpa [#allocation5 + $0x1], 1 }
 0x502   :  { %1485 = vsyncpa [#allocation7], 1 }
 0x503   :  { %1487 = vsyncpa [#allocation7 + $0x1], 1 }

</bundles_post_ra>
